<compile_context>
chip_gen: v6e
topology: v6e:2x2x1
jax: 0.10.0
libtpu: 0.0.40
codegen_flags: <defaults>
</compile_context>

<pallas_src>
import jax
import jax.numpy as jnp
from jax.experimental import pallas as pl
from jax.experimental.pallas import tpu as pltpu

# ---- static shape configuration (small, consistent with the module) ----
T, B, S = 8, 2, 10       # tgt seq len, batch, src seq len
S_K = 16                 # src len padded to a sublane multiple (K/V projection extent)
S_PAD = 128              # lane-dense padded src length for the attn-weights output
E = 32                   # decoder_embed_dim
C = 32                   # decoder_conv_dim
H = 4                    # decoder_attention_heads
DH = E // H              # head dim
K = 3                    # lightweight conv kernel size
FFN = 64                 # decoder_ffn_embed_dim
EPS = 1e-5               # LayerNorm eps (torch default)
NEG = -1e30              # stands in for masked_fill(-inf); exp underflows to 0

# bf16 MXU operands are the recommended path on v6e/v7x at realistic sizes
# (review item); kept f32 here so the toy-shape check matches the f32 module.
MXU_DTYPE = jnp.float32

# ---- packed small-vector buffer layout: one (NROWS, 128) f32 operand ----
ROW_B1, ROW_B2, ROW_LN1W, ROW_LN1B = 0, 1, 2, 3
ROW_BQ, ROW_BKV, ROW_BO, ROW_LN2W, ROW_LN2B = 4, 5, 6, 7, 8
ROW_BF1, ROW_BF2, ROW_LN3W, ROW_LN3B = 9, 10, 11, 12
ROW_WS = 13              # K rows: softmaxed lightweight-conv weights (C lanes)
ROW_KPM = ROW_WS + K     # B rows: additive key-padding mask (S_K lanes)
NROWS = ROW_KPM + B      # 18
VROW = 128


def _layer_norm(v, w, b):
    mu = jnp.mean(v, axis=-1, keepdims=True)
    var = jnp.mean(jnp.square(v - mu), axis=-1, keepdims=True)
    return (v - mu) * jax.lax.rsqrt(var + EPS) * w + b


def _linear(v2d, w, b):
    return jnp.dot(v2d.astype(MXU_DTYPE), w.astype(MXU_DTYPE),
                   preferred_element_type=jnp.float32) + b


def _softmax(v, axis):
    m = jnp.max(v, axis=axis, keepdims=True)
    e = jnp.exp(v - m)
    # divide -> EUP approx reciprocal (otherwise-idle slot); f32 softmax math.
    return e * pl.reciprocal(jnp.sum(e, axis=axis, keepdims=True), approx=True)


def decoder_layer_kernel(x_ref, enc_ref, vec_ref,
                         w1_ref, w2_ref, wq_ref, wkv_ref, wo_ref,
                         wf1_ref, wf2_ref,
                         out_ref, attn_ref):
    x = x_ref[...]                                   # (B*T, E), rows ordered (b, t)
    # position-in-sequence for every row (rows are (b, t)-ordered, so t = row % T)
    tpos = jax.lax.broadcasted_iota(jnp.int32, (B * T, 1), 0) % T

    # ---------------- lightweight-conv block (post-LN) ----------------
    residual = x
    h = _linear(x, w1_ref[...], vec_ref[ROW_B1, :2 * C])        # (B*T, 2C)
    y = h[:, :C] * jax.nn.sigmoid(h[:, C:])                     # GLU (lane split ok; XLU slack)

    conv = y * vec_ref[ROW_WS + K - 1, :C]                      # zero-shift tap
    for k in range(K - 1):                                      # causal conv, padding_l = K-1
        s = K - 1 - k                                           # shift in time steps (>= 1)
        # roll whole rows by s; rows with t < s are zeroed (causal padding).
        # NOTE: correctness relies on (b, t) row ordering + the tpos mask.
        shifted = jnp.where(tpos >= s, jnp.roll(y, s, axis=0), 0.0)
        conv = conv + shifted * vec_ref[ROW_WS + k, :C]

    x = _layer_norm(residual + _linear(conv, w2_ref[...], vec_ref[ROW_B2, :E]),
                    vec_ref[ROW_LN1W, :E], vec_ref[ROW_LN1B, :E])

    # ---------------- encoder-decoder attention block ----------------
    residual = x
    scaling = 1.0 / (DH ** 0.5)
    q = (_linear(x, wq_ref[...], vec_ref[ROW_BQ, :E]) * scaling).reshape(B, T, E)
    # fused K|V projection over the *un-padded* encoder extent (B*S_K rows only)
    kv = _linear(enc_ref[...], wkv_ref[...], vec_ref[ROW_BKV, :2 * E])  # (B*S_K, 2E)
    k3 = kv[:, :E].reshape(B, S_K, E)
    v3 = kv[:, E:].reshape(B, S_K, E)

    # head-batched operands with leading dim g = h*B + b, then one batched
    # dot_general pair for all heads (no per-head einsum loop, no loop-carried
    # attention accumulation).
    qh = jnp.concatenate([q[:, :, hd * DH:(hd + 1) * DH] for hd in range(H)], axis=0)
    kh = jnp.concatenate([k3[:, :, hd * DH:(hd + 1) * DH] for hd in range(H)], axis=0)
    vh = jnp.concatenate([v3[:, :, hd * DH:(hd + 1) * DH] for hd in range(H)], axis=0)

    sc = jnp.einsum('gtd,gsd->gts', qh.astype(MXU_DTYPE), kh.astype(MXU_DTYPE),
                    preferred_element_type=jnp.float32)          # (H*B, T, S_K)
    kpm = vec_ref[ROW_KPM:ROW_KPM + B, :S_K]                     # (B, S_K) additive mask
    p = _softmax(sc.reshape(H, B, T, S_K) + kpm[None, :, None, :], axis=-1)

    # head-averaged attention weights; lane-dense (S_PAD = 128) single full store
    attn_mean = jnp.mean(p, axis=0)                              # (B, T, S_K)
    attn_ref[...] = jnp.concatenate(
        [attn_mean, jnp.zeros((B, T, S_PAD - S_K), jnp.float32)], axis=-1)

    ao = jnp.einsum('gts,gsd->gtd',
                    p.reshape(H * B, T, S_K).astype(MXU_DTYPE),
                    vh.astype(MXU_DTYPE),
                    preferred_element_type=jnp.float32)          # (H*B, T, DH)
    ao = ao.reshape(H, B, T, DH)
    # merge heads back into the lane dim once, then a single output projection
    ao = jnp.concatenate([ao[hd] for hd in range(H)], axis=-1).reshape(B * T, E)
    x = _layer_norm(residual + _linear(ao, wo_ref[...], vec_ref[ROW_BO, :E]),
                    vec_ref[ROW_LN2W, :E], vec_ref[ROW_LN2B, :E])

    # ---------------- feed-forward block ----------------
    residual = x
    hf = jnp.maximum(_linear(x, wf1_ref[...], vec_ref[ROW_BF1, :FFN]), 0.0)
    xf = _linear(hf, wf2_ref[...], vec_ref[ROW_BF2, :E])
    out_ref[...] = _layer_norm(residual + xf,
                               vec_ref[ROW_LN3W, :E], vec_ref[ROW_LN3B, :E])


def lightconv_decoder_layer(x, enc, enc_pad_mask, params):
    """x: (T,B,E), enc: (S,B,E), enc_pad_mask: (B,S) bool (True = padding)."""
    (w1, b1, convw, w2, b2, ln1w, ln1b,
     wq, bq, wk, bk, wv, bv, wo, bo, ln2w, ln2b,
     wf1, bf1, wf2, bf2, ln3w, ln3b) = params

    # ---- layout plumbing done once by XLA outside the kernel ----
    x_bm = jnp.transpose(x, (1, 0, 2)).reshape(B * T, E)             # rows (b, t)
    enc_b = jnp.transpose(enc, (1, 0, 2))                            # (B, S, E)
    enc_p = jnp.zeros((B, S_K, E), jnp.float32).at[:, :S, :].set(enc_b)
    enc_bm = enc_p.reshape(B * S_K, E)                               # rows (b, s)

    # additive key-padding mask over the S_K-padded key extent
    kpm = jnp.full((B, S_K), NEG, jnp.float32).at[:, :S].set(
        jnp.where(enc_pad_mask, NEG, 0.0))

    # pure parameter transforms hoisted out of the kernel
    wsoft = jax.nn.softmax(convw, axis=0)                            # (K, C)
    wkv = jnp.concatenate([wk, wv], axis=1)                          # (E, 2E)
    bkv = jnp.concatenate([bk, bv], axis=0)                          # (2E,)

    # pack every small vector into one (NROWS, 128) buffer (one DMA, not ~15)
    vec = jnp.zeros((NROWS, VROW), jnp.float32)
    for row, v in ((ROW_B1, b1), (ROW_B2, b2), (ROW_LN1W, ln1w), (ROW_LN1B, ln1b),
                   (ROW_BQ, bq), (ROW_BKV, bkv), (ROW_BO, bo), (ROW_LN2W, ln2w),
                   (ROW_LN2B, ln2b), (ROW_BF1, bf1), (ROW_BF2, bf2),
                   (ROW_LN3W, ln3w), (ROW_LN3B, ln3b)):
        vec = vec.at[row, :v.shape[0]].set(v)
    vec = vec.at[ROW_WS:ROW_WS + K, :C].set(wsoft)
    vec = vec.at[ROW_KPM:ROW_KPM + B, :S_K].set(kpm)

    ins = [x_bm, enc_bm, vec, w1, w2, wq, wkv, wo, wf1, wf2]
    vmem = lambda: pl.BlockSpec(memory_space=pltpu.MemorySpace.VMEM)

    out2d, attn_pad = pl.pallas_call(
        decoder_layer_kernel,
        out_shape=(jax.ShapeDtypeStruct((B * T, E), jnp.float32),
                   jax.ShapeDtypeStruct((B, T, S_PAD), jnp.float32)),
        in_specs=[vmem() for _ in ins],
        out_specs=(vmem(), vmem()),
        compiler_params=pltpu.CompilerParams(vmem_limit_bytes=32 * 1024 * 1024),
    )(*ins)

    out = jnp.transpose(out2d.reshape(B, T, E), (1, 0, 2))           # (T, B, E)
    attn = attn_pad[:, :, :S]                                        # (B, T, S)
    return out, attn


# ---------------- pure-JAX reference (same math, for verification) ----------------
def reference(x, enc, kpm_add, p):
    (w1, b1, convw, w2, b2, ln1w, ln1b,
     wq, bq, wk, bk, wv, bv, wo, bo, ln2w, ln2b,
     wf1, bf1, wf2, bf2, ln3w, ln3b) = p

    residual = x
    h = x.reshape(T * B, E) @ w1 + b1
    a, g = h[:, :C], h[:, C:]
    y = (a * jax.nn.sigmoid(g)).reshape(T, B, C)
    wsoft = jax.nn.softmax(convw, axis=0)
    conv = jnp.zeros((T, B, C), jnp.float32)
    for k in range(K):
        s = K - 1 - k
        shifted = y if s == 0 else jnp.concatenate(
            [jnp.zeros((s, B, C), jnp.float32), y[: T - s]], axis=0)
        conv = conv + shifted * wsoft[k][None, None, :]
    x = residual + (conv.reshape(T * B, C) @ w2 + b2).reshape(T, B, E)
    x = _layer_norm(x, ln1w, ln1b)

    residual = x
    scaling = 1.0 / (DH ** 0.5)
    q = ((x.reshape(T * B, E) @ wq + bq).reshape(T, B, E)) * scaling
    kk = (enc.reshape(S * B, E) @ wk + bk).reshape(S, B, E)
    vv = (enc.reshape(S * B, E) @ wv + bv).reshape(S, B, E)
    qh = q.reshape(T, B, H, DH)
    kh = kk.reshape(S, B, H, DH)
    vh = vv.reshape(S, B, H, DH)
    scores = jnp.einsum('tbhd,sbhd->bhts', qh, kh) + kpm_add[:, None, None, :]
    pw = jax.nn.softmax(scores, axis=-1)
    attn = jnp.mean(pw, axis=1)                       # (B, T, S)
    ao = jnp.einsum('bhts,sbhd->tbhd', pw, vh).reshape(T, B, E)
    x = residual + (ao.reshape(T * B, E) @ wo + bo).reshape(T, B, E)
    x = _layer_norm(x, ln2w, ln2b)

    residual = x
    hf = jax.nn.relu(x.reshape(T * B, E) @ wf1 + bf1)
    x = residual + (hf @ wf2 + bf2).reshape(T, B, E)
    x = _layer_norm(x, ln3w, ln3b)
    return x, attn


def _xavier(key, fan_in, fan_out, gain=1.0):
    limit = gain * (6.0 / (fan_in + fan_out)) ** 0.5
    return jax.random.uniform(key, (fan_in, fan_out), jnp.float32, -limit, limit)


if __name__ == "__main__":
    root = jax.random.PRNGKey(0)
    ks = jax.random.split(root, 16)

    # inputs
    x = jax.random.normal(ks[0], (T, B, E), jnp.float32)
    enc = jax.random.normal(ks[1], (S, B, E), jnp.float32)
    # encoder_padding_mask: 1 => padding. batch 1 has last 3 positions padded.
    pad = jnp.zeros((B, S), jnp.bool_).at[1, 7:].set(True)
    kpm_add = jnp.where(pad, NEG, 0.0).astype(jnp.float32)

    R = C // H
    # parameters (deterministic, xavier-style); Linear biases are zero per module init
    w1 = _xavier(ks[2], E, 2 * C);            b1 = jnp.zeros((2 * C,), jnp.float32)
    conv_raw = _xavier(ks[3], H, K)           # LightweightConv weight (H, K)
    convw = jnp.repeat(conv_raw, R, axis=0).T  # expand heads->channels: (K, C)
    w2 = _xavier(ks[4], C, E);                b2 = jnp.zeros((E,), jnp.float32)
    ln1w = jnp.ones((E,), jnp.float32);       ln1b = jnp.zeros((E,), jnp.float32)
    g = 1.0 / (2.0 ** 0.5)                    # fairseq MHA qkv xavier gain
    wq = _xavier(ks[5], E, E, g);             bq = jnp.zeros((E,), jnp.float32)
    wk = _xavier(ks[6], E, E, g);             bk = jnp.zeros((E,), jnp.float32)
    wv = _xavier(ks[7], E, E, g);             bv = jnp.zeros((E,), jnp.float32)
    wo = _xavier(ks[8], E, E);                bo = jnp.zeros((E,), jnp.float32)
    ln2w = jnp.ones((E,), jnp.float32);       ln2b = jnp.zeros((E,), jnp.float32)
    wf1 = _xavier(ks[9], E, FFN);             bf1 = jnp.zeros((FFN,), jnp.float32)
    wf2 = _xavier(ks[10], FFN, E);            bf2 = jnp.zeros((E,), jnp.float32)
    ln3w = jnp.ones((E,), jnp.float32);       ln3b = jnp.zeros((E,), jnp.float32)

    params = [w1, b1, convw, w2, b2, ln1w, ln1b,
              wq, bq, wk, bk, wv, bv, wo, bo, ln2w, ln2b,
              wf1, bf1, wf2, bf2, ln3w, ln3b]

    # TODO(synk): dropout modules (p>0), incremental_state / prev_*_state caching
    # are inference-time/no-op paths and are not modeled in the kernel.

    fwd = jax.jit(lightconv_decoder_layer)
    out, attn = fwd(x, enc, pad, params)
    out = jax.block_until_ready(out)
    attn = jax.block_until_ready(attn)

    ref_out, ref_attn = reference(x, enc, kpm_add, params)
    # tolerances leave margin for the EUP approx-reciprocal softmax denominator
    assert jnp.allclose(out, ref_out, atol=5e-3, rtol=5e-3), \
        float(jnp.max(jnp.abs(out - ref_out)))
    assert jnp.allclose(attn, ref_attn, atol=2e-3, rtol=2e-3), \
        float(jnp.max(jnp.abs(attn - ref_attn)))

    print("KERNEL_OK")
</pallas_src>

<mosaic_0001>
module attributes {stable_mosaic.version = 11 : i64} {
  func.func @decoder_layer_kernel(%arg0: memref<16x32xf32, #tpu.memory_space<vmem>>, %arg1: memref<32x32xf32, #tpu.memory_space<vmem>>, %arg2: memref<18x128xf32, #tpu.memory_space<vmem>>, %arg3: memref<32x64xf32, #tpu.memory_space<vmem>>, %arg4: memref<32x32xf32, #tpu.memory_space<vmem>>, %arg5: memref<32x32xf32, #tpu.memory_space<vmem>>, %arg6: memref<32x64xf32, #tpu.memory_space<vmem>>, %arg7: memref<32x32xf32, #tpu.memory_space<vmem>>, %arg8: memref<32x64xf32, #tpu.memory_space<vmem>>, %arg9: memref<64x32xf32, #tpu.memory_space<vmem>>, %arg10: memref<16x32xf32, #tpu.memory_space<vmem>>, %arg11: memref<2x8x128xf32, #tpu.memory_space<vmem>>) attributes {dimension_semantics = [], scalar_prefetch = 0 : i64, scratch_operands = 0 : i64, tpu.core_type = #tpu.core_type<tc>} {
    %c0 = arith.constant 0 : index
    %c0_0 = arith.constant 0 : index
    %0 = vector.load %arg0[%c0, %c0_0] : memref<16x32xf32, #tpu.memory_space<vmem>>, vector<16x32xf32>
    %1 = tpu.iota {dimensions = array<i32: 0>} : vector<16x1xi32>
    %c8_i32 = arith.constant 8 : i32
    %c0_i32 = arith.constant 0 : i32
    %2 = arith.cmpi eq, %c8_i32, %c0_i32 : i32
    %c1_i32 = arith.constant 1 : i32
    %3 = arith.select %2, %c1_i32, %c8_i32 : i32
    %4 = vector.broadcast %3 : i32 to vector<16x1xi32>
    %5 = arith.remsi %1, %4 : vector<16x1xi32>
    %c0_i32_1 = arith.constant 0 : i32
    %6 = vector.broadcast %c0_i32_1 : i32 to vector<16x1xi32>
    %7 = arith.cmpi ne, %5, %6 : vector<16x1xi32>
    %c0_i32_2 = arith.constant 0 : i32
    %8 = vector.broadcast %c0_i32_2 : i32 to vector<16x1xi32>
    %9 = arith.cmpi slt, %5, %8 : vector<16x1xi32>
    %c0_i32_3 = arith.constant 0 : i32
    %10 = arith.cmpi slt, %3, %c0_i32_3 : i32
    %11 = vector.broadcast %10 : i1 to vector<16x1xi1>
    %12 = vector.broadcast %11 : vector<16x1xi1> to vector<16x1xi1>
    %13 = arith.xori %9, %12 : vector<16x1xi1>
    %14 = arith.andi %13, %7 : vector<16x1xi1>
    %15 = vector.broadcast %3 : i32 to vector<16x1xi32>
    %16 = arith.addi %5, %15 : vector<16x1xi32>
    %17 = arith.select %14, %16, %5 : vector<16x1xi1>, vector<16x1xi32>
    %c0_4 = arith.constant 0 : index
    %c0_5 = arith.constant 0 : index
    %18 = vector.load %arg3[%c0_4, %c0_5] : memref<32x64xf32, #tpu.memory_space<vmem>>, vector<32x64xf32>
    %c0_6 = arith.constant 0 : index
    %c0_7 = arith.constant 0 : index
    %19 = vector.load %arg2[%c0_6, %c0_7] : memref<18x128xf32, #tpu.memory_space<vmem>>, vector<1x64xf32>
    %20 = vector.shape_cast %19 : vector<1x64xf32> to vector<64xf32>
    %cst = arith.constant dense<0.000000e+00> : vector<16x64xf32>
    %21 = tpu.matmul %0, %18, %cst {dimension_numbers = #tpu.dot_dimension_numbers<[1], [0], [0], [1], [0, 0, 1, 1], [], []>} : vector<16x32xf32>, vector<32x64xf32>, vector<16x64xf32> -> vector<16x64xf32>
    %22 = vector.shape_cast %20 : vector<64xf32> to vector<1x64xf32>
    %23 = vector.broadcast %22 : vector<1x64xf32> to vector<16x64xf32>
    %24 = arith.addf %21, %23 : vector<16x64xf32>
    %25 = vector.extract_strided_slice %24 {offsets = [0, 0], sizes = [16, 32], strides = [1, 1]} : vector<16x64xf32> to vector<16x32xf32>
    %26 = vector.extract_strided_slice %24 {offsets = [0, 32], sizes = [16, 32], strides = [1, 1]} : vector<16x64xf32> to vector<16x32xf32>
    %27 = arith.negf %26 : vector<16x32xf32>
    %28 = math.exp %27 : vector<16x32xf32>
    %cst_8 = arith.constant 1.000000e+00 : f32
    %29 = vector.broadcast %cst_8 : f32 to vector<16x32xf32>
    %30 = arith.addf %29, %28 : vector<16x32xf32>
    %31 = arith.divf %29, %30 : vector<16x32xf32>
    %32 = arith.mulf %25, %31 : vector<16x32xf32>
    %c15 = arith.constant 15 : index
    %c0_9 = arith.constant 0 : index
    %33 = vector.load %arg2[%c15, %c0_9] : memref<18x128xf32, #tpu.memory_space<vmem>>, vector<1x32xf32>
    %34 = vector.shape_cast %33 : vector<1x32xf32> to vector<32xf32>
    %35 = vector.shape_cast %34 : vector<32xf32> to vector<1x32xf32>
    %36 = vector.broadcast %35 : vector<1x32xf32> to vector<16x32xf32>
    %37 = arith.mulf %32, %36 : vector<16x32xf32>
    %c2_i32 = arith.constant 2 : i32
    %38 = vector.broadcast %c2_i32 : i32 to vector<16x1xi32>
    %39 = arith.cmpi sge, %17, %38 : vector<16x1xi32>
    %40 = vector.extract_strided_slice %32 {offsets = [14, 0], sizes = [2, 32], strides = [1, 1]} : vector<16x32xf32> to vector<2x32xf32>
    %41 = vector.extract_strided_slice %32 {offsets = [0, 0], sizes = [14, 32], strides = [1, 1]} : vector<16x32xf32> to vector<14x32xf32>
    %42 = tpu.concatenate %40, %41 in 0 : vector<2x32xf32>, vector<14x32xf32> -> vector<16x32xf32>
    %cst_10 = arith.constant 0.000000e+00 : f32
    %43 = vector.shape_cast %39 : vector<16x1xi1> to vector<16x1xi1>
    %44 = vector.broadcast %43 : vector<16x1xi1> to vector<16x32xi1>
    %45 = vector.broadcast %cst_10 : f32 to vector<16x32xf32>
    %46 = arith.select %44, %42, %45 : vector<16x32xi1>, vector<16x32xf32>
    %c13 = arith.constant 13 : index
    %c0_11 = arith.constant 0 : index
    %47 = vector.load %arg2[%c13, %c0_11] : memref<18x128xf32, #tpu.memory_space<vmem>>, vector<1x32xf32>
    %48 = vector.shape_cast %47 : vector<1x32xf32> to vector<32xf32>
    %49 = vector.shape_cast %48 : vector<32xf32> to vector<1x32xf32>
    %50 = vector.broadcast %49 : vector<1x32xf32> to vector<16x32xf32>
    %51 = arith.mulf %46, %50 : vector<16x32xf32>
    %52 = arith.addf %37, %51 : vector<16x32xf32>
    %c1_i32_12 = arith.constant 1 : i32
    %53 = vector.broadcast %c1_i32_12 : i32 to vector<16x1xi32>
    %54 = arith.cmpi sge, %17, %53 : vector<16x1xi32>
    %55 = vector.extract_strided_slice %32 {offsets = [15, 0], sizes = [1, 32], strides = [1, 1]} : vector<16x32xf32> to vector<1x32xf32>
    %56 = vector.extract_strided_slice %32 {offsets = [0, 0], sizes = [15, 32], strides = [1, 1]} : vector<16x32xf32> to vector<15x32xf32>
    %57 = tpu.concatenate %55, %56 in 0 : vector<1x32xf32>, vector<15x32xf32> -> vector<16x32xf32>
    %cst_13 = arith.constant 0.000000e+00 : f32
    %58 = vector.shape_cast %54 : vector<16x1xi1> to vector<16x1xi1>
    %59 = vector.broadcast %58 : vector<16x1xi1> to vector<16x32xi1>
    %60 = vector.broadcast %cst_13 : f32 to vector<16x32xf32>
    %61 = arith.select %59, %57, %60 : vector<16x32xi1>, vector<16x32xf32>
    %c14 = arith.constant 14 : index
    %c0_14 = arith.constant 0 : index
    %62 = vector.load %arg2[%c14, %c0_14] : memref<18x128xf32, #tpu.memory_space<vmem>>, vector<1x32xf32>
    %63 = vector.shape_cast %62 : vector<1x32xf32> to vector<32xf32>
    %64 = vector.shape_cast %63 : vector<32xf32> to vector<1x32xf32>
    %65 = vector.broadcast %64 : vector<1x32xf32> to vector<16x32xf32>
    %66 = arith.mulf %61, %65 : vector<16x32xf32>
    %67 = arith.addf %52, %66 : vector<16x32xf32>
    %c0_15 = arith.constant 0 : index
    %c0_16 = arith.constant 0 : index
    %68 = vector.load %arg4[%c0_15, %c0_16] : memref<32x32xf32, #tpu.memory_space<vmem>>, vector<32x32xf32>
    %c1 = arith.constant 1 : index
    %c0_17 = arith.constant 0 : index
    %69 = vector.load %arg2[%c1, %c0_17] : memref<18x128xf32, #tpu.memory_space<vmem>>, vector<1x32xf32>
    %70 = vector.shape_cast %69 : vector<1x32xf32> to vector<32xf32>
    %cst_18 = arith.constant dense<0.000000e+00> : vector<16x32xf32>
    %71 = tpu.matmul %67, %68, %cst_18 {dimension_numbers = #tpu.dot_dimension_numbers<[1], [0], [0], [1], [0, 0, 1, 1], [], []>} : vector<16x32xf32>, vector<32x32xf32>, vector<16x32xf32> -> vector<16x32xf32>
    %72 = vector.shape_cast %70 : vector<32xf32> to vector<1x32xf32>
    %73 = vector.broadcast %72 : vector<1x32xf32> to vector<16x32xf32>
    %74 = arith.addf %71, %73 : vector<16x32xf32>
    %75 = arith.addf %0, %74 : vector<16x32xf32>
    %c2 = arith.constant 2 : index
    %c0_19 = arith.constant 0 : index
    %76 = vector.load %arg2[%c2, %c0_19] : memref<18x128xf32, #tpu.memory_space<vmem>>, vector<1x32xf32>
    %77 = vector.shape_cast %76 : vector<1x32xf32> to vector<32xf32>
    %c3 = arith.constant 3 : index
    %c0_20 = arith.constant 0 : index
    %78 = vector.load %arg2[%c3, %c0_20] : memref<18x128xf32, #tpu.memory_space<vmem>>, vector<1x32xf32>
    %79 = vector.shape_cast %78 : vector<1x32xf32> to vector<32xf32>
    %cst_21 = arith.constant dense<0.000000e+00> : vector<16xf32>
    %80 = vector.multi_reduction <add>, %75, %cst_21 [1] : vector<16x32xf32> to vector<16xf32>
    %81 = vector.shape_cast %80 : vector<16xf32> to vector<16x1xf32>
    %cst_22 = arith.constant 3.200000e+01 : f32
    %82 = vector.broadcast %cst_22 : f32 to vector<16x1xf32>
    %83 = arith.divf %81, %82 : vector<16x1xf32>
    %84 = vector.broadcast %83 : vector<16x1xf32> to vector<16x32xf32>
    %85 = arith.subf %75, %84 : vector<16x32xf32>
    %86 = arith.mulf %85, %85 : vector<16x32xf32>
    %cst_23 = arith.constant dense<0.000000e+00> : vector<16xf32>
    %87 = vector.multi_reduction <add>, %86, %cst_23 [1] : vector<16x32xf32> to vector<16xf32>
    %88 = vector.shape_cast %87 : vector<16xf32> to vector<16x1xf32>
    %cst_24 = arith.constant 3.200000e+01 : f32
    %89 = vector.broadcast %cst_24 : f32 to vector<16x1xf32>
    %90 = arith.divf %88, %89 : vector<16x1xf32>
    %91 = vector.broadcast %83 : vector<16x1xf32> to vector<16x32xf32>
    %92 = arith.subf %75, %91 : vector<16x32xf32>
    %cst_25 = arith.constant 9.99999974E-6 : f32
    %93 = vector.broadcast %cst_25 : f32 to vector<16x1xf32>
    %94 = arith.addf %90, %93 : vector<16x1xf32>
    %95 = math.rsqrt %94 : vector<16x1xf32>
    %96 = vector.broadcast %95 : vector<16x1xf32> to vector<16x32xf32>
    %97 = arith.mulf %92, %96 : vector<16x32xf32>
    %98 = vector.shape_cast %77 : vector<32xf32> to vector<1x32xf32>
    %99 = vector.broadcast %98 : vector<1x32xf32> to vector<16x32xf32>
    %100 = arith.mulf %97, %99 : vector<16x32xf32>
    %101 = vector.shape_cast %79 : vector<32xf32> to vector<1x32xf32>
    %102 = vector.broadcast %101 : vector<1x32xf32> to vector<16x32xf32>
    %103 = arith.addf %100, %102 : vector<16x32xf32>
    %c0_26 = arith.constant 0 : index
    %c0_27 = arith.constant 0 : index
    %104 = vector.load %arg5[%c0_26, %c0_27] : memref<32x32xf32, #tpu.memory_space<vmem>>, vector<32x32xf32>
    %c4 = arith.constant 4 : index
    %c0_28 = arith.constant 0 : index
    %105 = vector.load %arg2[%c4, %c0_28] : memref<18x128xf32, #tpu.memory_space<vmem>>, vector<1x32xf32>
    %106 = vector.shape_cast %105 : vector<1x32xf32> to vector<32xf32>
    %cst_29 = arith.constant dense<0.000000e+00> : vector<16x32xf32>
    %107 = tpu.matmul %103, %104, %cst_29 {dimension_numbers = #tpu.dot_dimension_numbers<[1], [0], [0], [1], [0, 0, 1, 1], [], []>} : vector<16x32xf32>, vector<32x32xf32>, vector<16x32xf32> -> vector<16x32xf32>
    %108 = vector.shape_cast %106 : vector<32xf32> to vector<1x32xf32>
    %109 = vector.broadcast %108 : vector<1x32xf32> to vector<16x32xf32>
    %110 = arith.addf %107, %109 : vector<16x32xf32>
    %cst_30 = arith.constant 0.353553385 : f32
    %111 = vector.broadcast %cst_30 : f32 to vector<16x32xf32>
    %112 = arith.mulf %110, %111 : vector<16x32xf32>
    %113 = vector.shape_cast %112 : vector<16x32xf32> to vector<2x8x32xf32>
    %c0_31 = arith.constant 0 : index
    %c0_32 = arith.constant 0 : index
    %114 = vector.load %arg1[%c0_31, %c0_32] : memref<32x32xf32, #tpu.memory_space<vmem>>, vector<32x32xf32>
    %c0_33 = arith.constant 0 : index
    %c0_34 = arith.constant 0 : index
    %115 = vector.load %arg6[%c0_33, %c0_34] : memref<32x64xf32, #tpu.memory_space<vmem>>, vector<32x64xf32>
    %c5 = arith.constant 5 : index
    %c0_35 = arith.constant 0 : index
    %116 = vector.load %arg2[%c5, %c0_35] : memref<18x128xf32, #tpu.memory_space<vmem>>, vector<1x64xf32>
    %117 = vector.shape_cast %116 : vector<1x64xf32> to vector<64xf32>
    %cst_36 = arith.constant dense<0.000000e+00> : vector<32x64xf32>
    %118 = tpu.matmul %114, %115, %cst_36 {dimension_numbers = #tpu.dot_dimension_numbers<[1], [0], [0], [1], [0, 0, 1, 1], [], []>} : vector<32x32xf32>, vector<32x64xf32>, vector<32x64xf32> -> vector<32x64xf32>
    %119 = vector.shape_cast %117 : vector<64xf32> to vector<1x64xf32>
    %120 = vector.broadcast %119 : vector<1x64xf32> to vector<32x64xf32>
    %121 = arith.addf %118, %120 : vector<32x64xf32>
    %122 = vector.extract_strided_slice %121 {offsets = [0, 0], sizes = [32, 32], strides = [1, 1]} : vector<32x64xf32> to vector<32x32xf32>
    %123 = vector.shape_cast %122 : vector<32x32xf32> to vector<2x16x32xf32>
    %124 = vector.extract_strided_slice %121 {offsets = [0, 32], sizes = [32, 32], strides = [1, 1]} : vector<32x64xf32> to vector<32x32xf32>
    %125 = vector.shape_cast %124 : vector<32x32xf32> to vector<2x16x32xf32>
    %126 = vector.extract_strided_slice %113 {offsets = [0, 0, 0], sizes = [2, 8, 8], strides = [1, 1, 1]} : vector<2x8x32xf32> to vector<2x8x8xf32>
    %127 = vector.extract_strided_slice %113 {offsets = [0, 0, 8], sizes = [2, 8, 8], strides = [1, 1, 1]} : vector<2x8x32xf32> to vector<2x8x8xf32>
    %128 = vector.extract_strided_slice %113 {offsets = [0, 0, 16], sizes = [2, 8, 8], strides = [1, 1, 1]} : vector<2x8x32xf32> to vector<2x8x8xf32>
    %129 = vector.extract_strided_slice %113 {offsets = [0, 0, 24], sizes = [2, 8, 8], strides = [1, 1, 1]} : vector<2x8x32xf32> to vector<2x8x8xf32>
    %130 = tpu.concatenate %126, %127, %128, %129 in 0 : vector<2x8x8xf32>, vector<2x8x8xf32>, vector<2x8x8xf32>, vector<2x8x8xf32> -> vector<8x8x8xf32>
    %131 = vector.extract_strided_slice %123 {offsets = [0, 0, 0], sizes = [2, 16, 8], strides = [1, 1, 1]} : vector<2x16x32xf32> to vector<2x16x8xf32>
    %132 = vector.extract_strided_slice %123 {offsets = [0, 0, 8], sizes = [2, 16, 8], strides = [1, 1, 1]} : vector<2x16x32xf32> to vector<2x16x8xf32>
    %133 = vector.extract_strided_slice %123 {offsets = [0, 0, 16], sizes = [2, 16, 8], strides = [1, 1, 1]} : vector<2x16x32xf32> to vector<2x16x8xf32>
    %134 = vector.extract_strided_slice %123 {offsets = [0, 0, 24], sizes = [2, 16, 8], strides = [1, 1, 1]} : vector<2x16x32xf32> to vector<2x16x8xf32>
    %135 = tpu.concatenate %131, %132, %133, %134 in 0 : vector<2x16x8xf32>, vector<2x16x8xf32>, vector<2x16x8xf32>, vector<2x16x8xf32> -> vector<8x16x8xf32>
    %136 = vector.extract_strided_slice %125 {offsets = [0, 0, 0], sizes = [2, 16, 8], strides = [1, 1, 1]} : vector<2x16x32xf32> to vector<2x16x8xf32>
    %137 = vector.extract_strided_slice %125 {offsets = [0, 0, 8], sizes = [2, 16, 8], strides = [1, 1, 1]} : vector<2x16x32xf32> to vector<2x16x8xf32>
    %138 = vector.extract_strided_slice %125 {offsets = [0, 0, 16], sizes = [2, 16, 8], strides = [1, 1, 1]} : vector<2x16x32xf32> to vector<2x16x8xf32>
    %139 = vector.extract_strided_slice %125 {offsets = [0, 0, 24], sizes = [2, 16, 8], strides = [1, 1, 1]} : vector<2x16x32xf32> to vector<2x16x8xf32>
    %140 = tpu.concatenate %136, %137, %138, %139 in 0 : vector<2x16x8xf32>, vector<2x16x8xf32>, vector<2x16x8xf32>, vector<2x16x8xf32> -> vector<8x16x8xf32>
    "tpu.trace_start"() <{level = 10 : i32, message = "gtd,gsd->gts"}> : () -> ()
    %cst_37 = arith.constant dense<0.000000e+00> : vector<8x8x16xf32>
    %141 = tpu.matmul %130, %135, %cst_37 {dimension_numbers = #tpu.dot_dimension_numbers<[2], [2], [1], [1], [0, 0, 0, 1, 1, 1], [0], [0]>} : vector<8x8x8xf32>, vector<8x16x8xf32>, vector<8x8x16xf32> -> vector<8x8x16xf32>
    "tpu.trace_stop"() : () -> ()
    %c16 = arith.constant 16 : index
    %c0_38 = arith.constant 0 : index
    %142 = vector.load %arg2[%c16, %c0_38] : memref<18x128xf32, #tpu.memory_space<vmem>>, vector<2x16xf32>
    %143 = vector.shape_cast %141 : vector<8x8x16xf32> to vector<4x2x8x16xf32>
    %144 = vector.shape_cast %142 : vector<2x16xf32> to vector<1x2x1x16xf32>
    %145 = vector.broadcast %144 : vector<1x2x1x16xf32> to vector<4x2x8x16xf32>
    %146 = arith.addf %143, %145 : vector<4x2x8x16xf32>
    %cst_39 = arith.constant dense<0xFF800000> : vector<4x2x8xf32>
    %147 = vector.multi_reduction <maximumf>, %146, %cst_39 [3] : vector<4x2x8x16xf32> to vector<4x2x8xf32>
    %148 = vector.shape_cast %147 : vector<4x2x8xf32> to vector<4x2x8x1xf32>
    %149 = vector.broadcast %148 : vector<4x2x8x1xf32> to vector<4x2x8x16xf32>
    %150 = arith.subf %146, %149 : vector<4x2x8x16xf32>
    %151 = math.exp %150 : vector<4x2x8x16xf32>
    %cst_40 = arith.constant dense<0.000000e+00> : vector<4x2x8xf32>
    %152 = vector.multi_reduction <add>, %151, %cst_40 [3] : vector<4x2x8x16xf32> to vector<4x2x8xf32>
    %153 = vector.shape_cast %152 : vector<4x2x8xf32> to vector<4x2x8x1xf32>
    %154 = tpu.reciprocal %153 {approx = true} : vector<4x2x8x1xf32> -> vector<4x2x8x1xf32>
    %155 = vector.broadcast %154 : vector<4x2x8x1xf32> to vector<4x2x8x16xf32>
    %156 = arith.mulf %151, %155 : vector<4x2x8x16xf32>
    %cst_41 = arith.constant dense<0.000000e+00> : vector<2x8x16xf32>
    %157 = vector.multi_reduction <add>, %156, %cst_41 [0] : vector<4x2x8x16xf32> to vector<2x8x16xf32>
    %cst_42 = arith.constant 4.000000e+00 : f32
    %158 = vector.broadcast %cst_42 : f32 to vector<2x8x16xf32>
    %159 = arith.divf %157, %158 : vector<2x8x16xf32>
    %cst_43 = arith.constant 0.000000e+00 : f32
    %160 = vector.broadcast %cst_43 : f32 to vector<2x8x112xf32>
    %161 = tpu.concatenate %159, %160 in 2 : vector<2x8x16xf32>, vector<2x8x112xf32> -> vector<2x8x128xf32>
    %c0_44 = arith.constant 0 : index
    %c0_45 = arith.constant 0 : index
    %c0_46 = arith.constant 0 : index
    %162 = vector.load %arg11[%c0_44, %c0_45, %c0_46] : memref<2x8x128xf32, #tpu.memory_space<vmem>>, vector<2x8x128xf32>
    tpu.vector_store %arg11[%c0_44, %c0_45, %c0_46], %161 {strides = array<i32>} : memref<2x8x128xf32, #tpu.memory_space<vmem>>, vector<2x8x128xf32>,
    %163 = vector.shape_cast %156 : vector<4x2x8x16xf32> to vector<8x8x16xf32>
    "tpu.trace_start"() <{level = 10 : i32, message = "gts,gsd->gtd"}> : () -> ()
    %cst_47 = arith.constant dense<0.000000e+00> : vector<8x8x8xf32>
    %164 = tpu.matmul %163, %140, %cst_47 {dimension_numbers = #tpu.dot_dimension_numbers<[2], [1], [1], [2], [0, 0, 0, 1, 1, 2], [0], [0]>} : vector<8x8x16xf32>, vector<8x16x8xf32>, vector<8x8x8xf32> -> vector<8x8x8xf32>
    "tpu.trace_stop"() : () -> ()
    %165 = vector.shape_cast %164 : vector<8x8x8xf32> to vector<4x2x8x8xf32>
    %166 = vector.extract_strided_slice %165 {offsets = [0, 0, 0, 0], sizes = [1, 2, 8, 8], strides = [1, 1, 1, 1]} : vector<4x2x8x8xf32> to vector<1x2x8x8xf32>
    %167 = vector.shape_cast %166 : vector<1x2x8x8xf32> to vector<2x8x8xf32>
    %168 = vector.extract_strided_slice %165 {offsets = [1, 0, 0, 0], sizes = [1, 2, 8, 8], strides = [1, 1, 1, 1]} : vector<4x2x8x8xf32> to vector<1x2x8x8xf32>
    %169 = vector.shape_cast %168 : vector<1x2x8x8xf32> to vector<2x8x8xf32>
    %170 = vector.extract_strided_slice %165 {offsets = [2, 0, 0, 0], sizes = [1, 2, 8, 8], strides = [1, 1, 1, 1]} : vector<4x2x8x8xf32> to vector<1x2x8x8xf32>
    %171 = vector.shape_cast %170 : vector<1x2x8x8xf32> to vector<2x8x8xf32>
    %172 = vector.extract_strided_slice %165 {offsets = [3, 0, 0, 0], sizes = [1, 2, 8, 8], strides = [1, 1, 1, 1]} : vector<4x2x8x8xf32> to vector<1x2x8x8xf32>
    %173 = vector.shape_cast %172 : vector<1x2x8x8xf32> to vector<2x8x8xf32>
    %174 = tpu.concatenate %167, %169, %171, %173 in 2 : vector<2x8x8xf32>, vector<2x8x8xf32>, vector<2x8x8xf32>, vector<2x8x8xf32> -> vector<2x8x32xf32>
    %175 = vector.shape_cast %174 : vector<2x8x32xf32> to vector<16x32xf32>
    %c0_48 = arith.constant 0 : index
    %c0_49 = arith.constant 0 : index
    %176 = vector.load %arg7[%c0_48, %c0_49] : memref<32x32xf32, #tpu.memory_space<vmem>>, vector<32x32xf32>
    %c6 = arith.constant 6 : index
    %c0_50 = arith.constant 0 : index
    %177 = vector.load %arg2[%c6, %c0_50] : memref<18x128xf32, #tpu.memory_space<vmem>>, vector<1x32xf32>
    %178 = vector.shape_cast %177 : vector<1x32xf32> to vector<32xf32>
    %cst_51 = arith.constant dense<0.000000e+00> : vector<16x32xf32>
    %179 = tpu.matmul %175, %176, %cst_51 {dimension_numbers = #tpu.dot_dimension_numbers<[1], [0], [0], [1], [0, 0, 1, 1], [], []>} : vector<16x32xf32>, vector<32x32xf32>, vector<16x32xf32> -> vector<16x32xf32>
    %180 = vector.shape_cast %178 : vector<32xf32> to vector<1x32xf32>
    %181 = vector.broadcast %180 : vector<1x32xf32> to vector<16x32xf32>
    %182 = arith.addf %179, %181 : vector<16x32xf32>
    %183 = arith.addf %103, %182 : vector<16x32xf32>
    %c7 = arith.constant 7 : index
    %c0_52 = arith.constant 0 : index
    %184 = vector.load %arg2[%c7, %c0_52] : memref<18x128xf32, #tpu.memory_space<vmem>>, vector<1x32xf32>
    %185 = vector.shape_cast %184 : vector<1x32xf32> to vector<32xf32>
    %c8 = arith.constant 8 : index
    %c0_53 = arith.constant 0 : index
    %186 = vector.load %arg2[%c8, %c0_53] : memref<18x128xf32, #tpu.memory_space<vmem>>, vector<1x32xf32>
    %187 = vector.shape_cast %186 : vector<1x32xf32> to vector<32xf32>
    %cst_54 = arith.constant dense<0.000000e+00> : vector<16xf32>
    %188 = vector.multi_reduction <add>, %183, %cst_54 [1] : vector<16x32xf32> to vector<16xf32>
    %189 = vector.shape_cast %188 : vector<16xf32> to vector<16x1xf32>
    %cst_55 = arith.constant 3.200000e+01 : f32
    %190 = vector.broadcast %cst_55 : f32 to vector<16x1xf32>
    %191 = arith.divf %189, %190 : vector<16x1xf32>
    %192 = vector.broadcast %191 : vector<16x1xf32> to vector<16x32xf32>
    %193 = arith.subf %183, %192 : vector<16x32xf32>
    %194 = arith.mulf %193, %193 : vector<16x32xf32>
    %cst_56 = arith.constant dense<0.000000e+00> : vector<16xf32>
    %195 = vector.multi_reduction <add>, %194, %cst_56 [1] : vector<16x32xf32> to vector<16xf32>
    %196 = vector.shape_cast %195 : vector<16xf32> to vector<16x1xf32>
    %cst_57 = arith.constant 3.200000e+01 : f32
    %197 = vector.broadcast %cst_57 : f32 to vector<16x1xf32>
    %198 = arith.divf %196, %197 : vector<16x1xf32>
    %199 = vector.broadcast %191 : vector<16x1xf32> to vector<16x32xf32>
    %200 = arith.subf %183, %199 : vector<16x32xf32>
    %cst_58 = arith.constant 9.99999974E-6 : f32
    %201 = vector.broadcast %cst_58 : f32 to vector<16x1xf32>
    %202 = arith.addf %198, %201 : vector<16x1xf32>
    %203 = math.rsqrt %202 : vector<16x1xf32>
    %204 = vector.broadcast %203 : vector<16x1xf32> to vector<16x32xf32>
    %205 = arith.mulf %200, %204 : vector<16x32xf32>
    %206 = vector.shape_cast %185 : vector<32xf32> to vector<1x32xf32>
    %207 = vector.broadcast %206 : vector<1x32xf32> to vector<16x32xf32>
    %208 = arith.mulf %205, %207 : vector<16x32xf32>
    %209 = vector.shape_cast %187 : vector<32xf32> to vector<1x32xf32>
    %210 = vector.broadcast %209 : vector<1x32xf32> to vector<16x32xf32>
    %211 = arith.addf %208, %210 : vector<16x32xf32>
    %c0_59 = arith.constant 0 : index
    %c0_60 = arith.constant 0 : index
    %212 = vector.load %arg8[%c0_59, %c0_60] : memref<32x64xf32, #tpu.memory_space<vmem>>, vector<32x64xf32>
    %c9 = arith.constant 9 : index
    %c0_61 = arith.constant 0 : index
    %213 = vector.load %arg2[%c9, %c0_61] : memref<18x128xf32, #tpu.memory_space<vmem>>, vector<1x64xf32>
    %214 = vector.shape_cast %213 : vector<1x64xf32> to vector<64xf32>
    %cst_62 = arith.constant dense<0.000000e+00> : vector<16x64xf32>
    %215 = tpu.matmul %211, %212, %cst_62 {dimension_numbers = #tpu.dot_dimension_numbers<[1], [0], [0], [1], [0, 0, 1, 1], [], []>} : vector<16x32xf32>, vector<32x64xf32>, vector<16x64xf32> -> vector<16x64xf32>
    %216 = vector.shape_cast %214 : vector<64xf32> to vector<1x64xf32>
    %217 = vector.broadcast %216 : vector<1x64xf32> to vector<16x64xf32>
    %218 = arith.addf %215, %217 : vector<16x64xf32>
    %cst_63 = arith.constant 0.000000e+00 : f32
    %219 = vector.broadcast %cst_63 : f32 to vector<16x64xf32>
    %220 = arith.maximumf %218, %219 : vector<16x64xf32>
    %c0_64 = arith.constant 0 : index
    %c0_65 = arith.constant 0 : index
    %221 = vector.load %arg9[%c0_64, %c0_65] : memref<64x32xf32, #tpu.memory_space<vmem>>, vector<64x32xf32>
    %c10 = arith.constant 10 : index
    %c0_66 = arith.constant 0 : index
    %222 = vector.load %arg2[%c10, %c0_66] : memref<18x128xf32, #tpu.memory_space<vmem>>, vector<1x32xf32>
    %223 = vector.shape_cast %222 : vector<1x32xf32> to vector<32xf32>
    %cst_67 = arith.constant dense<0.000000e+00> : vector<16x32xf32>
    %224 = tpu.matmul %220, %221, %cst_67 {dimension_numbers = #tpu.dot_dimension_numbers<[1], [0], [0], [1], [0, 0, 1, 1], [], []>} : vector<16x64xf32>, vector<64x32xf32>, vector<16x32xf32> -> vector<16x32xf32>
    %225 = vector.shape_cast %223 : vector<32xf32> to vector<1x32xf32>
    %226 = vector.broadcast %225 : vector<1x32xf32> to vector<16x32xf32>
    %227 = arith.addf %224, %226 : vector<16x32xf32>
    %228 = arith.addf %211, %227 : vector<16x32xf32>
    %c11 = arith.constant 11 : index
    %c0_68 = arith.constant 0 : index
    %229 = vector.load %arg2[%c11, %c0_68] : memref<18x128xf32, #tpu.memory_space<vmem>>, vector<1x32xf32>
    %230 = vector.shape_cast %229 : vector<1x32xf32> to vector<32xf32>
    %c12 = arith.constant 12 : index
    %c0_69 = arith.constant 0 : index
    %231 = vector.load %arg2[%c12, %c0_69] : memref<18x128xf32, #tpu.memory_space<vmem>>, vector<1x32xf32>
    %232 = vector.shape_cast %231 : vector<1x32xf32> to vector<32xf32>
    %cst_70 = arith.constant dense<0.000000e+00> : vector<16xf32>
    %233 = vector.multi_reduction <add>, %228, %cst_70 [1] : vector<16x32xf32> to vector<16xf32>
    %234 = vector.shape_cast %233 : vector<16xf32> to vector<16x1xf32>
    %cst_71 = arith.constant 3.200000e+01 : f32
    %235 = vector.broadcast %cst_71 : f32 to vector<16x1xf32>
    %236 = arith.divf %234, %235 : vector<16x1xf32>
    %237 = vector.broadcast %236 : vector<16x1xf32> to vector<16x32xf32>
    %238 = arith.subf %228, %237 : vector<16x32xf32>
    %239 = arith.mulf %238, %238 : vector<16x32xf32>
    %cst_72 = arith.constant dense<0.000000e+00> : vector<16xf32>
    %240 = vector.multi_reduction <add>, %239, %cst_72 [1] : vector<16x32xf32> to vector<16xf32>
    %241 = vector.shape_cast %240 : vector<16xf32> to vector<16x1xf32>
    %cst_73 = arith.constant 3.200000e+01 : f32
    %242 = vector.broadcast %cst_73 : f32 to vector<16x1xf32>
    %243 = arith.divf %241, %242 : vector<16x1xf32>
    %244 = vector.broadcast %236 : vector<16x1xf32> to vector<16x32xf32>
    %245 = arith.subf %228, %244 : vector<16x32xf32>
    %cst_74 = arith.constant 9.99999974E-6 : f32
    %246 = vector.broadcast %cst_74 : f32 to vector<16x1xf32>
    %247 = arith.addf %243, %246 : vector<16x1xf32>
    %248 = math.rsqrt %247 : vector<16x1xf32>
    %249 = vector.broadcast %248 : vector<16x1xf32> to vector<16x32xf32>
    %250 = arith.mulf %245, %249 : vector<16x32xf32>
    %251 = vector.shape_cast %230 : vector<32xf32> to vector<1x32xf32>
    %252 = vector.broadcast %251 : vector<1x32xf32> to vector<16x32xf32>
    %253 = arith.mulf %250, %252 : vector<16x32xf32>
    %254 = vector.shape_cast %232 : vector<32xf32> to vector<1x32xf32>
    %255 = vector.broadcast %254 : vector<1x32xf32> to vector<16x32xf32>
    %256 = arith.addf %253, %255 : vector<16x32xf32>
    %c0_75 = arith.constant 0 : index
    %c0_76 = arith.constant 0 : index
    %257 = vector.load %arg10[%c0_75, %c0_76] : memref<16x32xf32, #tpu.memory_space<vmem>>, vector<16x32xf32>
    tpu.vector_store %arg10[%c0_75, %c0_76], %256 {strides = array<i32>} : memref<16x32xf32, #tpu.memory_space<vmem>>, vector<16x32xf32>,
    return
  }
}

</mosaic_0001>

<bundles_post_ra>
// kernel: lightconv_decoder_layer.1
= control target key start
LH: loop header
LB: loop body
LE: loop exit
PB: predicated region body
PF: predicated region fallthrough
CT: control target
= control target key end

     0   :  { %vm76_vm0 = vcmask 261120   ;;  %s3470_s0 = inlined_call_operand.vmem [shape: f32[16,32], index: 0, kind: input, shape index: {}]   ;;  %s3471_s1 = inlined_call_operand.vmem [shape: f32[32,32], index: 1, kind: input, shape index: {}]   ;;  %s3472_s2 = inlined_call_operand.vmem [shape: f32[18,128], index: 2, kind: input, shape index: {}]   ;;  %s3473_s3 = inlined_call_operand.vmem [shape: f32[32,64], index: 3, kind: input, shape index: {}]   ;;  %s3474_s4 = inlined_call_operand.vmem [shape: f32[32,32], index: 4, kind: input, shape index: {}]   ;;  %s3475_s5 = inlined_call_operand.vmem [shape: f32[32,32], index: 5, kind: input, shape index: {}]   ;;  %s3476_s6 = inlined_call_operand.vmem [shape: f32[32,64], index: 6, kind: input, shape index: {}]   ;;  %s3477_s7 = inlined_call_operand.vmem [shape: f32[32,32], index: 7, kind: input, shape index: {}]   ;;  %s3478_s8 = inlined_call_operand.vmem [shape: f32[32,64], index: 8, kind: input, shape index: {}]   ;;  %s3479_s9 = inlined_call_operand.vmem [shape: f32[64,32], index: 9, kind: input, shape index: {}]   ;;  %s3480_s10 = inlined_call_operand.vmem [shape: f32[16,32], index: 10, kind: output, shape index: {0}]   ;;  %s3481_s11 = inlined_call_operand.hbm [shape: f32[2,8,128], index: 11, kind: output, shape index: {1}]  }
   0x1   :  { %v70_v0 = vld [vmem:[%s3473_s3 + $0x18] sm:$0xff]  ;;  %v69_v1 = vld [vmem:[%s3473_s3 + $0x10] sm:$0xff]  ;;  %v2953_v2 = vld [vmem:[%s3470_s0] sm:$0xff] }
   0x2   :  { %2586 = vmatprep.subr.mxu1 %v70_v0  ;;  %v68_v3 = vld [vmem:[%s3473_s3 + $0x8] sm:$0xff]  ;;  %2594 = vmatprep.mubr.msk.f32.mxu1 %vm76_vm0, %v2953_v2 }
   0x3   :  { %2587 = vmatpush3.msra.mxu1 %v70_v0 }
   0x4   :  { %17 = vsyncpa [#allocation3], 0  ;;  %2588 = vmatprep.subr.mxu1 %v69_v1  ;;  %v67_v4 = vld [vmem:[%s3473_s3] sm:$0xff]  ;;  %v2966_v5 = vld [vmem:[%s3470_s0 + $0x8] sm:$0xff]  ;;  %s2872_s16 = smov 96   ;;  %v40_v23 = vlaneseq  ;;  %vm193_vm1 = vcmask 1041408  }
   0x5   :  { %2589 = vmatpush3.msra.mxu1 %v69_v1  ;;  %v2423_v6 = vld [vmem:[%s3472_s2] ss:$0 sm:$0xff]  ;;  %v242_v17 = vld [vmem:[%s3474_s4 + $0x18] sm:$0xff]  ;;  %v241_v18 = vld [vmem:[%s3474_s4 + $0x10] sm:$0xff]  ;;  %vm218_vm2 = vcmask 1040384   ;;  %s2874_s29 = smov 120  }
   0x6   :  { %2590 = vmatprep.subr.mxu1 %v68_v3  ;;  %v240_v20 = vld [vmem:[%s3474_s4 + $0x8] sm:$0xff]  ;;  %v239_v21 = vld [vmem:[%s3474_s4] sm:$0xff]  ;;  %v2987_v24 = vshrl.u32 %v40_v23, 7  ;;  %vm616_vm7 = vcmask 64512   ;;  %vm2876_vm8 = vmmov 0   ;;  %s2877_s15 = smov 104  }
   0x7   :  { %2591 = vmatpush3.msra.mxu1 %v68_v3  ;;  %v2428_v40 = vld [vmem:[%s3472_s2 + $0xf] ss:$0 sm:$0xff]  ;;  %v2429_v41 = vld [vmem:[%s3472_s2 + $0xd] ss:$0 sm:$0xff]  ;;  %v2430_v46 = vld [vmem:[%s3472_s2 + $0xe] ss:$0 sm:$0xff] }
   0x8   :  { %2592 = vmatprep.subr.mxu1 %v67_v4  ;;  %v42_v25 = vadd.s32 8, %v2987_v24  ;;  %v47_v27 = vand.u32 7, %v2987_v24  ;;  %v2431_v62 = vld [vmem:[%s3472_s2 + $0x1] ss:$0 sm:$0xff]  ;;  %vm1267_vm9 = vcmask 130048   ;;  %s2880_s4 = smov 16  }
   0x9   :  { %2593 = vmatpush3.msra.mxu1 %v67_v4  ;;  %s2881_s25 = smov 24   ;;  %vm2037_vm10 = vcmask 195584   ;;  %vm2277_vm11 = vcmask 523264  }
   0xa   :  { %2595 = vmatmul.mubr.msk.f32.vlgmr.msra.gmra.mxu1 %vm76_vm0, %v2966_v5  ;;  %2597 = vmatprep.subr.mxu1 %v242_v17  ;;  %v54_v28 = vand.u32 7, %v42_v25  ;;  %vm2991_vm3 = vcmp.ge.s32.totalorder %v47_v27, 2  ;;  %vm3003_vm6 = vcmp.ge.s32.totalorder %v47_v27, 1  ;;  %v375_v25 = vld [vmem:[%s3475_s5 + $0x18] sm:$0xff]  ;;  %v373_v27 = vld [vmem:[%s3475_s5 + $0x8] sm:$0xff] }
   0xb   :  { %2598 = vmatpush3.msra.mxu1 %v242_v17  ;;  %2608 = vmatprep.subr.mxu0 %v375_v25 }
   0xc   :  { %2599 = vmatprep.subr.mxu1 %v241_v18  ;;  %vm2995_vm4 = vcmp.ge.s32.totalorder %v54_v28, 2  ;;  %vm2999_vm5 = vcmp.ge.s32.totalorder %v54_v28, 1  ;;  %2609 = vmatpush3.msra.mxu0 %v375_v25  ;;  %v372_v28 = vld [vmem:[%s3475_s5] sm:$0xff]  ;;  %v1251_v25 = vsub.s32 0, %v2987_v24 }
   0xd   :  { %2600 = vmatpush3.msra.mxu1 %v241_v18 }
   0xe   :  { %2601 = vmatprep.subr.mxu1 %v240_v20 }
   0xf   :  { %2602 = vmatpush3.msra.mxu1 %v240_v20 }
  0x10   :  { %2603 = vmatprep.subr.mxu1 %v239_v21 }
  0x11   :  { %2604 = vmatpush3.msra.mxu1 %v239_v21 }
  0xca   :  { %v2596_v7 = vpop.f32.mrf.mxu1 }
  0xcb   :  { %v155_v8 = vadd.f32 %v2596_v7, %v2423_v6 }
  0xcc   :  { %v149_v9 = vpop.f32.mrf.mxu1 }
  0xcd   :  { %v2427_v10 = vmul.f32 -1.442695, %v155_v8  ;;  %v150_v11 = vadd.f32 %v2423_v6, %v149_v9  ;;  %v470_v9 = vld [vmem:[%s3476_s6 + $0x10] sm:$0xff] }
  0xcf   :  { %v2426_v12 = vmul.f32 -1.442695, %v150_v11  ;;  %2798 = vpow2.f32 %v2427_v10  ;;  %v468_v10 = vld [vmem:[%s3476_s6] sm:$0xff] }
  0xd1   :  { %2800 = vpow2.f32 %v2426_v12  ;;  %v466_v12 = vld [vmem:[%s3471_s1 + $0x10] sm:$0xff] }
  0xdc   :  { %v2799_v13 = vpop.eup %2798 }
  0xdd   :  { %v165_v16 = vadd.f32 1.0, %v2799_v13  ;;  %v467_v13 = vld [vmem:[%s3471_s1 + $0x18] sm:$0xff] }
  0xde   :  { %v2801_v14 = vpop.eup %2800 }
  0xdf   :  { %v164_v15 = vadd.f32 1.0, %v2801_v14 }
  0xe1   :  { %2802 = vrcp.f32 %v164_v15 }
  0xe2   :  { %2804 = vrcp.f32 %v165_v16 }
  0xee   :  { %v2803_v19 = vpop.eup %2802 }
  0xef   :  { %172 = vrot.lane.b32.xlu0 %v2803_v19, %s2872_s16  ;;  %v2805_v22 = vpop.eup %2804 }
  0xf3   :  { %174 = vrot.lane.b32.xlu0 %v2805_v22, %s2872_s16 }
 0x161   :  { %v173_v26 = vpop.permute.xlu0 %172 }
 0x162   :  { %v178_v29 = vmul.f32 %v173_v26, %v150_v11  ;;  %v465_v11 = vld [vmem:[%s3471_s1 + $0x8] sm:$0xff]  ;;  %v374_v26 = vld [vmem:[%s3475_s5 + $0x10] sm:$0xff]  ;;  %s2875_s5 = smov 112  }
 0x163   :  { %2610 = vmatprep.subr.mxu0 %v374_v26 }
 0x164   :  { %v194_v36 = vrot.slane %v178_v29, 6  ;;  %v219_v37 = vrot.slane %v178_v29, 7  ;;  %v185_v51 = vmul.f32 %v2428_v40, %v178_v29  ;;  %2611 = vmatpush3.msra.mxu0 %v374_v26  ;;  %v2873_v29 = vmov 0.0  }
 0x165   :  { %v175_v30 = vpop.permute.xlu0 %174  ;;  %2612 = vmatprep.subr.mxu0 %v373_v27 }
 0x166   :  { %v179_v31 = vmul.f32 %v175_v30, %v155_v8  ;;  %v471_v8 = vld [vmem:[%s3476_s6 + $0x18] sm:$0xff]  ;;  %2613 = vmatpush3.msra.mxu0 %v373_v27  ;;  %v2439_v30 = vld [vmem:[%s3472_s2 + $0x5] ss:$0 sm:$0xff] }
 0x167   :  { %2619 = vmatprep.subr.mxu1 %v471_v8  ;;  %2614 = vmatprep.subr.mxu0 %v372_v28 }
 0x168   :  { %v190_v38 = vrot.slane %v179_v31, 6  ;;  %v216_v39 = vrot.slane %v179_v31, 7  ;;  %v186_v52 = vmul.f32 %v2428_v40, %v179_v31  ;;  %2615 = vmatpush3.msra.mxu0 %v372_v28 }
 0x169   :  { %2633 = vmatprep.subr.mxu0 %v2873_v29 }
 0x16a   :  { %v195_v42 = vsel %vm193_vm1, %v194_v36, %v190_v38  ;;  %v198_v43 = vsel %vm193_vm1, %v190_v38, %v194_v36  ;;  %v220_v44 = vsel %vm218_vm2, %v219_v37, %v216_v39  ;;  %v223_v45 = vsel %vm218_vm2, %v216_v39, %v219_v37 }
 0x16b   :  { %v203_v47 = vsel %vm2991_vm3, %v198_v43, 0.0  ;;  %v204_v48 = vsel %vm2995_vm4, %v195_v42, 0.0  ;;  %v229_v49 = vsel %vm2999_vm5, %v220_v44, 0.0  ;;  %v228_v50 = vsel %vm3003_vm6, %v223_v45, 0.0 }
 0x16c   :  { %v210_v53 = vmul.f32 %v2429_v41, %v203_v47  ;;  %v211_v54 = vmul.f32 %v2429_v41, %v204_v48  ;;  %v236_v56 = vmul.f32 %v2430_v46, %v229_v49  ;;  %v235_v58 = vmul.f32 %v2430_v46, %v228_v50  ;;  %v2434_v46 = vld [vmem:[%s3472_s2 + $0x2] ss:$0 sm:$0xff]  ;;  %v2435_v48 = vld [vmem:[%s3472_s2 + $0x3] ss:$0 sm:$0xff] }
 0x16e   :  { %v213_v55 = vadd.f32 %v211_v54, %v186_v52  ;;  %v212_v57 = vadd.f32 %v210_v53, %v185_v51 }
 0x170   :  { %v238_v59 = vadd.f32 %v236_v56, %v213_v55  ;;  %v237_v60 = vadd.f32 %v235_v58, %v212_v57  ;;  %v2436_v57 = vld [vmem:[%s3472_s2 + $0x4] ss:$0 sm:$0xff] }
 0x172   :  { %2605 = vmatprep.mubr.msk.f32.mxu1 %vm76_vm0, %v237_v60 }
 0x173   :  { %2606 = vmatmul.mubr.msk.f32.vlgmr.msra.gmra.mxu1 %vm76_vm0, %v238_v59 }
 0x174   :  { %2620 = vmatpush3.msra.mxu1 %v471_v8 }
 0x175   :  { %2621 = vmatprep.subr.mxu1 %v470_v9 }
 0x176   :  { %2622 = vmatpush3.msra.mxu1 %v470_v9 }
 0x233   :  { %v2607_v61 = vpop.f32.mrf.mxu1 }
 0x234   :  { %v326_v0 = vadd.f32 %v2607_v61, %v2431_v62 }
 0x235   :  { %v320_v63 = vpop.f32.mrf.mxu1 }
 0x236   :  { %v321_v1 = vadd.f32 %v2431_v62, %v320_v63  ;;  %v330_v6 = vadd.f32 %v326_v0, %v2966_v5  ;;  %v469_v5 = vld [vmem:[%s3476_s6 + $0x8] sm:$0xff] }
 0x237   :  { %2623 = vmatprep.subr.mxu1 %v469_v5 }
 0x238   :  { %v329_v3 = vadd.f32 %v321_v1, %v2953_v2  ;;  %v336_v7 = vsel %vm76_vm0, %v330_v6, 0.0  ;;  %v464_v2 = vld [vmem:[%s3471_s1] sm:$0xff]  ;;  %2624 = vmatpush3.msra.mxu1 %v469_v5 }
 0x239   :  { %2627 = vmatprep.mubr.msk.f32.mxu1 %vm76_vm0, %v464_v2  ;;  %2625 = vmatprep.subr.mxu1 %v468_v10 }
 0x23a   :  { %v333_v4 = vsel %vm76_vm0, %v329_v3, 0.0  ;;  %2626 = vmatpush3.msra.mxu1 %v468_v10 }
 0x23b   :  { %334 = vadd.xlane.f32.xlu1 %v333_v4  ;;  %2628 = vmatmul.mubr.msk.f32.vlgmr.msra.gmra.mxu1 %vm76_vm0, %v465_v11 }
 0x23c   :  { %2630 = vmatprep.mubr.msk.f32.mxu1 %vm76_vm0, %v466_v12  ;;  %2640 = vmatprep.subr.mxu1 %v2873_v29 }
 0x23f   :  { %337 = vadd.xlane.f32.xlu1 %v336_v7  ;;  %2631 = vmatmul.mubr.msk.f32.gmra.mxu1 %vm76_vm0, %v467_v13 }
 0x240   :  { %2644 = vmatprep.mubr.msk.f32.mxu1 %vm2876_vm8, %v2873_v29 }
 0x2c4   :  { %v335_v14 = vpop.xlane.xlu1 %334 }
 0x2c5   :  { %v340_v15 = vmul.f32 0.03125, %v335_v14 }
 0x2c7   :  { %v342_v16 = vsub.f32 %v329_v3, %v340_v15 }
 0x2c8   :  { %v338_v17 = vpop.xlane.xlu1 %337 }
 0x2c9   :  { %v341_v18 = vmul.f32 0.03125, %v338_v17  ;;  %v344_v19 = vmul.f32 %v342_v16, %v342_v16  ;;  %v2878_v17 = vmov 1966171168  }
 0x2cb   :  { %v343_v20 = vsub.f32 %v330_v6, %v341_v18  ;;  %v346_v21 = vsel %vm76_vm0, %v344_v19, 0.0  ;;  %v1236_v18 = vunpack.c.l.s4 %v2878_v17 }
 0x2cc   :  { %347 = vadd.xlane.f32.xlu0 %v346_v21 }
 0x2cd   :  { %v345_v22 = vmul.f32 %v343_v20, %v343_v20  ;;  %v1237_v19 = vunpack.c.0.s8 %v1236_v18 }
 0x2cf   :  { %v349_v23 = vsel %vm76_vm0, %v345_v22, 0.0  ;;  %v1240_v22 = vsub.s32 %v1237_v19, %v2987_v24 }
 0x2d0   :  { %350 = vadd.xlane.f32.xlu1 %v349_v23 }
 0x2fb   :  { %v2629_v31 = vpop.f32.mrf.mxu1 }
 0x2fc   :  { %v3080_v32 = vadd.f32 %v2629_v31, %v2439_v30 }
 0x2fd   :  { %v555_v33 = vpop.f32.mrf.mxu1 }
 0x2fe   :  { %594 = vrot.lane.b32.xlu1 %v3080_v32, %s2874_s29  ;;  %v3086_v37 = vadd.f32 %v2439_v30, %v555_v33 }
 0x2ff   :  { %v2632_v34 = vpop.f32.mrf.mxu1 }
 0x300   :  { %v3084_v35 = vadd.f32 %v2632_v34, %v2439_v30 }
 0x301   :  { %v565_v36 = vpop.f32.mrf.mxu1 }
 0x302   :  { %598 = vrot.lane.b32.xlu1 %v3084_v35, %s2874_s29  ;;  %2641 = vmatpush3.xpose.msk.msra.mxu1 %vm616_vm7, %v3084_v35  ;;  %v3093_v38 = vadd.f32 %v2439_v30, %v565_v36 }
 0x303   :  { %2642 = vmatprep.subr.mxu1 %v2873_v29 }
 0x306   :  { %592 = vrot.lane.b32.xlu1 %v3086_v37, %s2874_s29  ;;  %2643 = vmatpush3.xpose.msk.msra.mxu1 %vm616_vm7, %v3093_v38 }
 0x307   :  { %2654 = vmatprep.subr.mxu1 %v2873_v29 }
 0x30a   :  { %596 = vrot.lane.b32.xlu1 %v3093_v38, %s2874_s29 }
 0x30e   :  { %602 = vrot.lane.b32.xlu1 %v3080_v32, %s2875_s5 }
 0x312   :  { %606 = vrot.lane.b32.xlu1 %v3084_v35, %s2875_s5 }
 0x316   :  { %600 = vrot.lane.b32.xlu1 %v3086_v37, %s2875_s5 }
 0x31a   :  { %604 = vrot.lane.b32.xlu1 %v3093_v38, %s2875_s5 }
 0x355   :  { %v348_v39 = vpop.xlane.xlu0 %347 }
 0x356   :  { %v352_v40 = vmul.f32 0.03125, %v348_v39 }
 0x358   :  { %v354_v41 = vadd.f32 1e-05, %v352_v40 }
 0x359   :  { %v351_v42 = vpop.xlane.xlu1 %350 }
 0x35a   :  { %2806 = vrsqrt.f32 %v354_v41  ;;  %v353_v43 = vmul.f32 0.03125, %v351_v42 }
 0x35c   :  { %v355_v44 = vadd.f32 1e-05, %v353_v43 }
 0x35e   :  { %2808 = vrsqrt.f32 %v355_v44 }
 0x367   :  { %v2807_v45 = vpop.eup %2806 }
 0x368   :  { %v358_v47 = vmul.f32 %v2807_v45, %v342_v16 }
 0x36a   :  { %v364_v49 = vmul.f32 %v2434_v46, %v358_v47 }
 0x36b   :  { %v2809_v50 = vpop.eup %2808 }
 0x36c   :  { %v359_v51 = vmul.f32 %v2809_v50, %v343_v20  ;;  %v3116_v52 = vadd.f32 %v2435_v48, %v364_v49  ;;  %v2468_v20 = vld.sshfl [vmem:[%s3472_s2 + $0x10] sm:$0x11 pattern:$0x75316420] }
 0x36d   :  { %v1234_v21 = vcombine.high %v2468_v20, %v2468_v20  ;;  %v1241_v26 = vrot.slane %v2468_v20, %v1240_v22 }
 0x36e   :  { %v365_v53 = vmul.f32 %v2434_v46, %v359_v51  ;;  %2616 = vmatprep.mubr.msk.f32.mxu0 %vm76_vm0, %v3116_v52 }
 0x36f   :  { %v1248_v23 = vrot.slane %v1234_v21, %v1240_v22  ;;  %v1252_v28 = vrot.slane %v1241_v26, %v1251_v25 }
 0x370   :  { %v3120_v54 = vadd.f32 %v2435_v48, %v365_v53  ;;  %v3134_v55 = vpop.permute.xlu1 %594 }
 0x371   :  { %v1256_v27 = vrot.slane %v1248_v23, %v1251_v25 }
 0x372   :  { %2617 = vmatmul.mubr.msk.f32.vlgmr.msra.gmra.mxu0 %vm76_vm0, %v3120_v54 }
 0x373   :  { %2634 = vmatpush3.xpose.msk.msra.mxu0 %vm616_vm7, %v3080_v32  ;;  %2637 = vmatprep.mubr.msk.f32.mxu0 %vm2876_vm8, %v2873_v29 }
 0x374   :  { %2635 = vmatprep.subr.mxu0 %v2873_v29  ;;  %v3136_v56 = vpop.permute.xlu1 %598 }
 0x377   :  { %2636 = vmatpush3.xpose.msk.msra.mxu0 %vm616_vm7, %v3086_v37 }
 0x378   :  { %2647 = vmatprep.subr.mxu0 %v2873_v29  ;;  %v3141_v63 = vpop.permute.xlu1 %592 }
 0x37c   :  { %v3155_v1 = vpop.permute.xlu1 %596 }
 0x380   :  { %v3173_v3 = vpop.permute.xlu1 %602 }
 0x384   :  { %v3175_v4 = vpop.permute.xlu1 %606 }
 0x388   :  { %v3177_v6 = vpop.permute.xlu1 %600 }
 0x38c   :  { %v3179_v7 = vpop.permute.xlu1 %604 }
 0x432   :  { %v2618_v58 = vpop.f32.mrf.mxu0 }
 0x433   :  { %v459_v59 = vadd.f32 %v2618_v58, %v2436_v57 }
 0x434   :  { %v453_v60 = vpop.f32.mrf.mxu0 }
 0x435   :  { %v463_v61 = vmul.f32 0.35355338, %v459_v59  ;;  %v454_v62 = vadd.f32 %v2436_v57, %v453_v60 }
 0x437   :  { %v462_v0 = vmul.f32 0.35355338, %v454_v62  ;;  %578 = vrot.lane.b32.xlu1 %v463_v61, %s2874_s29  ;;  %2645 = vmatmul.mubr.msk.f32.vlgmr.msra.gmra.mxu1 %vm616_vm7, %v463_v61 }
 0x438   :  { %2655 = vmatpush3.xpose.msk.msra.mxu1 %vm616_vm7, %v3136_v56  ;;  %2658 = vmatprep.mubr.msk.f32.mxu1 %vm2876_vm8, %v2873_v29 }
 0x439   :  { %576 = vrot.lane.b32.xlu0 %v462_v0, %s2874_s29  ;;  %2638 = vmatmul.mubr.msk.f32.vlgmr.msra.gmra.mxu0 %vm616_vm7, %v462_v0 }
 0x43a   :  { %2648 = vmatpush3.xpose.msk.msra.mxu0 %vm616_vm7, %v3134_v55  ;;  %2656 = vmatprep.subr.mxu1 %v2873_v29 }
 0x43b   :  { %610 = vrot.lane.b32.xlu1 %v3080_v32, %s2877_s15  ;;  %2649 = vmatprep.subr.mxu0 %v2873_v29 }
 0x43c   :  { %2657 = vmatpush3.xpose.msk.msra.mxu1 %vm616_vm7, %v3155_v1  ;;  %2651 = vmatprep.mubr.msk.f32.mxu0 %vm2876_vm8, %v2873_v29 }
 0x43d   :  { %582 = vrot.lane.b32.xlu0 %v463_v61, %s2875_s5  ;;  %2668 = vmatprep.subr.mxu1 %v2873_v29 }
 0x43e   :  { %2650 = vmatpush3.xpose.msk.msra.mxu0 %vm616_vm7, %v3141_v63 }
 0x43f   :  { %614 = vrot.lane.b32.xlu1 %v3084_v35, %s2877_s15  ;;  %2661 = vmatprep.subr.mxu0 %v2873_v29 }
 0x441   :  { %580 = vrot.lane.b32.xlu0 %v462_v0, %s2875_s5 }
 0x443   :  { %612 = vrot.lane.b32.xlu1 %v3093_v38, %s2877_s15 }
 0x445   :  { %608 = vrot.lane.b32.xlu0 %v3086_v37, %s2877_s15 }
 0x447   :  { %586 = vrot.lane.b32.xlu1 %v463_v61, %s2877_s15 }
 0x449   :  { %584 = vrot.lane.b32.xlu0 %v462_v0, %s2877_s15 }
 0x44b   :  { %1379 = vrot.lane.b32.xlu1 %v3080_v32, %s2872_s16 }
 0x4a9   :  { %v579_v8 = vpop.permute.xlu1 %578 }
 0x4aa   :  { %2659 = vmatmul.mubr.msk.f32.vlgmr.msra.gmra.mxu1 %vm616_vm7, %v579_v8 }
 0x4ab   :  { %2669 = vmatpush3.xpose.msk.msra.mxu1 %vm616_vm7, %v3175_v4  ;;  %v577_v9 = vpop.permute.xlu0 %576  ;;  %2672 = vmatprep.mubr.msk.f32.mxu1 %vm2876_vm8, %v2873_v29 }
 0x4ac   :  { %2652 = vmatmul.mubr.msk.f32.vlgmr.msra.gmra.mxu0 %vm616_vm7, %v577_v9  ;;  %2670 = vmatprep.subr.mxu1 %v2873_v29 }
 0x4ad   :  { %2662 = vmatpush3.xpose.msk.msra.mxu0 %vm616_vm7, %v3173_v3  ;;  %v3190_v2 = vpop.permute.xlu1 %610  ;;  %2665 = vmatprep.mubr.msk.f32.mxu0 %vm2876_vm8, %v2873_v29 }
 0x4ae   :  { %2663 = vmatprep.subr.mxu0 %v2873_v29 }
 0x4af   :  { %2671 = vmatpush3.xpose.msk.msra.mxu1 %vm616_vm7, %v3179_v7  ;;  %v583_v5 = vpop.permute.xlu0 %582 }
 0x4b0   :  { %2682 = vmatprep.subr.mxu1 %v2873_v29 }
 0x4b1   :  { %2664 = vmatpush3.xpose.msk.msra.mxu0 %vm616_vm7, %v3177_v6  ;;  %v3200_v10 = vpop.permute.xlu1 %614 }
 0x4b2   :  { %2673 = vmatmul.mubr.msk.f32.vlgmr.msra.gmra.mxu1 %vm616_vm7, %v583_v5  ;;  %2675 = vmatprep.subr.mxu0 %v2873_v29 }
 0x4b3   :  { %2683 = vmatpush3.xpose.msk.msra.mxu1 %vm616_vm7, %v3200_v10  ;;  %v581_v11 = vpop.permute.xlu0 %580  ;;  %2686 = vmatprep.mubr.msk.f32.mxu1 %vm2876_vm8, %v2873_v29 }
 0x4b4   :  { %2666 = vmatmul.mubr.msk.f32.vlgmr.msra.gmra.mxu0 %vm616_vm7, %v581_v11  ;;  %2684 = vmatprep.subr.mxu1 %v2873_v29 }
 0x4b5   :  { %2676 = vmatpush3.xpose.msk.msra.mxu0 %vm616_vm7, %v3190_v2  ;;  %v3212_v12 = vpop.permute.xlu1 %612  ;;  %2679 = vmatprep.mubr.msk.f32.mxu0 %vm2876_vm8, %v2873_v29 }
 0x4b6   :  { %2677 = vmatprep.subr.mxu0 %v2873_v29 }
 0x4b7   :  { %2685 = vmatpush3.xpose.msk.msra.mxu1 %vm616_vm7, %v3212_v12  ;;  %v3219_v13 = vpop.permute.xlu0 %608 }
 0x4b8   :  { %2696 = vmatprep.subr.mxu1 %v2873_v29 }
 0x4b9   :  { %2678 = vmatpush3.xpose.msk.msra.mxu0 %vm616_vm7, %v3219_v13  ;;  %v587_v14 = vpop.permute.xlu1 %586 }
 0x4ba   :  { %2687 = vmatmul.mubr.msk.f32.vlgmr.msra.gmra.mxu1 %vm616_vm7, %v587_v14  ;;  %2689 = vmatprep.subr.mxu0 %v2873_v29 }
 0x4bb   :  { %v585_v15 = vpop.permute.xlu0 %584  ;;  %2700 = vmatprep.mubr.msk.f32.mxu1 %vm2876_vm8, %v2873_v29 }
 0x4bc   :  { %2680 = vmatmul.mubr.msk.f32.vlgmr.msra.gmra.mxu0 %vm616_vm7, %v585_v15 }
 0x4bd   :  { %v1380_v16 = vpop.permute.xlu1 %1379  ;;  %2693 = vmatprep.mubr.msk.f32.mxu0 %vm2876_vm8, %v2873_v29 }
 0x4be   :  { %2690 = vmatpush3.msra.mxu0 %v1380_v16 }
 0x4bf   :  { %2691 = vmatprep.subr.mxu0 %v2873_v29 }
 0x4f7   :  { %v765_v30 = vpop.f32.mrf.mxu1 }
 0x4f8   :  { %v1260_v31 = vadd.f32 %v1256_v27, %v765_v30 }
 0x4f9   :  { %v689_v32 = vpop.f32.mrf.mxu0  ;;  %v2646_v33 = vpop.f32.mrf.mxu1 }
 0x4fa   :  { %v1259_v34 = vadd.f32 %v1252_v28, %v689_v32  ;;  %v1271_v36 = vsel %vm1267_vm9, %v1260_v31, -inf }
 0x4fb   :  { %1272 = vmax.xlane.f32.xlu1 %v1271_v36  ;;  %v2639_v39 = vpop.f32.mrf.mxu0 }
 0x4fc   :  { %v1268_v40 = vsel %vm1267_vm9, %v1259_v34, -inf }
 0x4fd   :  { %1269 = vmax.xlane.f32.xlu0 %v1268_v40 }
 0x56a   :  { %v917_v41 = vpop.f32.mrf.mxu1 }
 0x56b   :  { %v1262_v42 = vadd.f32 %v1256_v27, %v917_v41 }
 0x56c   :  { %v841_v43 = vpop.f32.mrf.mxu0  ;;  %v2660_v24 = vpop.f32.mrf.mxu1 }
 0x56d   :  { %v1261_v44 = vadd.f32 %v1252_v28, %v841_v43  ;;  %v1277_v45 = vsel %vm1267_vm9, %v1262_v42, -inf }
 0x56e   :  { %v2653_v46 = vpop.f32.mrf.mxu0  ;;  %1278 = vmax.xlane.f32.xlu0 %v1277_v45 }
 0x56f   :  { %v1274_v47 = vsel %vm1267_vm9, %v1261_v44, -inf }
 0x572   :  { %v1069_v48 = vpop.f32.mrf.mxu1  ;;  %1275 = vmax.xlane.f32.xlu0 %v1274_v47 }
 0x573   :  { %v1264_v49 = vadd.f32 %v1256_v27, %v1069_v48 }
 0x574   :  { %v2674_v50 = vpop.f32.mrf.mxu1  ;;  %v993_v51 = vpop.f32.mrf.mxu0 }
 0x575   :  { %v1263_v53 = vadd.f32 %v1252_v28, %v993_v51  ;;  %v1283_v57 = vsel %vm1267_vm9, %v1264_v49, -inf }
 0x576   :  { %v2667_v58 = vpop.f32.mrf.mxu0  ;;  %1284 = vmax.xlane.f32.xlu0 %v1283_v57 }
 0x577   :  { %v1280_v59 = vsel %vm1267_vm9, %v1263_v53, -inf }
 0x578   :  { %1281 = vmax.xlane.f32.xlu1 %v1280_v59 }
 0x57a   :  { %v1221_v60 = vpop.f32.mrf.mxu1 }
 0x57b   :  { %v1266_v61 = vadd.f32 %v1256_v27, %v1221_v60 }
 0x57c   :  { %v1145_v62 = vpop.f32.mrf.mxu0  ;;  %v2688_v0 = vpop.f32.mrf.mxu1 }
 0x57d   :  { %v1289_v8 = vsel %vm1267_vm9, %v1266_v61, -inf }
 0x57e   :  { %v2681_v9 = vpop.f32.mrf.mxu0  ;;  %1290 = vmax.xlane.f32.xlu0 %v1289_v8 }
 0x589   :  { %1377 = vrot.lane.b32.xlu1 %v3086_v37, %s2872_s16  ;;  %v1273_v37 = vpop.xlane.xlu1 %1272 }
 0x58a   :  { %v1293_v5 = vsub.f32 %v1260_v31, %v1273_v37 }
 0x58d   :  { %1456 = vrot.lane.b32.xlu1 %v3093_v38, %s2872_s16  ;;  %v3260_v38 = vadd.f32 %v1252_v28, %v1145_v62 }
 0x594   :  { %1458 = vrot.lane.b32.xlu0 %v3084_v35, %s2872_s16  ;;  %v1286_v35 = vsel %vm1267_vm9, %v3260_v38, -inf }
 0x598   :  { %1537 = vrot.lane.b32.xlu0 %v3134_v55, %s2872_s16  ;;  %v1302_v55 = vmul.f32 1.442695, %v1293_v5 }
 0x59a   :  { %2810 = vpow2.f32 %v1302_v55 }
 0x59c   :  { %1535 = vrot.lane.b32.xlu0 %v3141_v63, %s2872_s16 }
 0x5a0   :  { %1695 = vrot.lane.b32.xlu0 %v3173_v3, %s2872_s16 }
 0x5a4   :  { %1693 = vrot.lane.b32.xlu0 %v3177_v6, %s2872_s16  ;;  %v1270_v6 = vpop.xlane.xlu0 %1269 }
 0x5a7   :  { %v3266_v63 = vpop.eup %2810 }
 0x5a8   :  { %1853 = vrot.lane.b32.xlu0 %v3190_v2, %s2872_s16  ;;  %v1319_v3 = vsel %vm1267_vm9, %v3266_v63, 0.0 }
 0x5b1   :  { %1287 = vmax.xlane.f32.xlu1 %v1286_v35 }
 0x5c2   :  { %1616 = vrot.lane.b32.xlu1 %v3136_v56, %s2872_s16  ;;  %v1292_v56 = vsub.f32 %v1259_v34, %v1270_v6 }
 0x5c4   :  { %v1300_v2 = vmul.f32 1.442695, %v1292_v56 }
 0x5c6   :  { %1614 = vrot.lane.b32.xlu1 %v3155_v1, %s2872_s16  ;;  %2812 = vpow2.f32 %v1300_v2 }
 0x5c7   :  { %1320 = vadd.xlane.f32.xlu0 %v1319_v3 }
 0x5ca   :  { %1774 = vrot.lane.b32.xlu1 %v3175_v4, %s2872_s16 }
 0x5ce   :  { %1772 = vrot.lane.b32.xlu1 %v3179_v7, %s2872_s16 }
 0x5d2   :  { %1932 = vrot.lane.b32.xlu1 %v3200_v10, %s2872_s16 }
 0x5d3   :  { %v3278_v11 = vpop.eup %2812 }
 0x5d4   :  { %v1316_v1 = vsel %vm1267_vm9, %v3278_v11, 0.0 }
 0x5f6   :  { %1317 = vadd.xlane.f32.xlu1 %v1316_v1 }
 0x5f7   :  { %v1279_v14 = vpop.xlane.xlu0 %1278 }
 0x5f8   :  { %v1295_v15 = vsub.f32 %v1262_v42, %v1279_v14 }
 0x5fa   :  { %v1306_v16 = vmul.f32 1.442695, %v1295_v15 }
 0x5fb   :  { %v1276_v4 = vpop.xlane.xlu0 %1275 }
 0x5fc   :  { %2814 = vpow2.f32 %v1306_v16  ;;  %v1294_v17 = vsub.f32 %v1261_v44, %v1276_v4 }
 0x5fe   :  { %v1304_v7 = vmul.f32 1.442695, %v1294_v17 }
 0x5ff   :  { %v1285_v18 = vpop.xlane.xlu0 %1284 }
 0x600   :  { %2816 = vpow2.f32 %v1304_v7  ;;  %v1297_v10 = vsub.f32 %v1264_v49, %v1285_v18 }
 0x601   :  { %v1282_v19 = vpop.xlane.xlu1 %1281 }
 0x602   :  { %v1310_v20 = vmul.f32 1.442695, %v1297_v10  ;;  %v1296_v21 = vsub.f32 %v1263_v53, %v1282_v19 }
 0x604   :  { %2818 = vpow2.f32 %v1310_v20  ;;  %v1308_v22 = vmul.f32 1.442695, %v1296_v21 }
 0x605   :  { %v1378_v23 = vpop.permute.xlu1 %1377 }
 0x606   :  { %2820 = vpow2.f32 %v1308_v22  ;;  %2692 = vmatpush3.msra.mxu0 %v1378_v23 }
 0x607   :  { %v1291_v25 = vpop.xlane.xlu0 %1290  ;;  %2703 = vmatprep.subr.mxu0 %v2873_v29 }
 0x608   :  { %v1299_v26 = vsub.f32 %v1266_v61, %v1291_v25 }
 0x609   :  { %v3283_v27 = vpop.eup %2814  ;;  %v1457_v33 = vpop.permute.xlu1 %1456 }
 0x60a   :  { %v1314_v28 = vmul.f32 1.442695, %v1299_v26  ;;  %v1325_v30 = vsel %vm1267_vm9, %v3283_v27, 0.0 }
 0x60b   :  { %v1459_v31 = vpop.permute.xlu0 %1458  ;;  %1326 = vadd.xlane.f32.xlu0 %v1325_v30 }
 0x60c   :  { %2822 = vpow2.f32 %v1314_v28  ;;  %2697 = vmatpush3.msra.mxu1 %v1459_v31 }
 0x60d   :  { %v3287_v32 = vpop.eup %2816  ;;  %2698 = vmatprep.subr.mxu1 %v2873_v29 }
 0x60e   :  { %2699 = vmatpush3.msra.mxu1 %v1457_v33  ;;  %v1322_v34 = vsel %vm1267_vm9, %v3287_v32, 0.0 }
 0x60f   :  { %1323 = vadd.xlane.f32.xlu1 %v1322_v34  ;;  %2710 = vmatprep.subr.mxu1 %v2873_v29  ;;  %v1538_v24 = vpop.permute.xlu0 %1537 }
 0x611   :  { %v3293_v36 = vpop.eup %2818 }
 0x612   :  { %v1331_v39 = vsel %vm1267_vm9, %v3293_v36, 0.0 }
 0x613   :  { %v3297_v40 = vpop.eup %2820  ;;  %1332 = vadd.xlane.f32.xlu0 %v1331_v39  ;;  %v1536_v44 = vpop.permute.xlu0 %1535 }
 0x614   :  { %v1328_v41 = vsel %vm1267_vm9, %v3297_v40, 0.0 }
 0x615   :  { %1329 = vadd.xlane.f32.xlu1 %v1328_v41 }
 0x617   :  { %v1696_v48 = vpop.permute.xlu0 %1695 }
 0x619   :  { %v3301_v42 = vpop.eup %2822 }
 0x61a   :  { %v1337_v43 = vsel %vm1267_vm9, %v3301_v42, 0.0 }
 0x61b   :  { %1338 = vadd.xlane.f32.xlu0 %v1337_v43  ;;  %v1694_v49 = vpop.permute.xlu0 %1693 }
 0x61f   :  { %v3310_v51 = vpop.permute.xlu0 %1853 }
 0x631   :  { %1851 = vrot.lane.b32.xlu0 %v3219_v13, %s2872_s16 }
 0x63a   :  { %v1288_v45 = vpop.xlane.xlu1 %1287 }
 0x63b   :  { %v1298_v46 = vsub.f32 %v3260_v38, %v1288_v45 }
 0x63d   :  { %v1312_v47 = vmul.f32 1.442695, %v1298_v46 }
 0x63e   :  { %v1617_v13 = vpop.permute.xlu1 %1616 }
 0x63f   :  { %2824 = vpow2.f32 %v1312_v47 }
 0x642   :  { %v1615_v60 = vpop.permute.xlu1 %1614 }
 0x646   :  { %v1775_v61 = vpop.permute.xlu1 %1774 }
 0x64a   :  { %v1773_v62 = vpop.permute.xlu1 %1772 }
 0x64c   :  { %v3308_v50 = vpop.eup %2824 }
 0x64d   :  { %v1334_v53 = vsel %vm1267_vm9, %v3308_v50, 0.0 }
 0x64e   :  { %1335 = vadd.xlane.f32.xlu1 %v1334_v53  ;;  %v1933_v0 = vpop.permute.xlu1 %1932  ;;  %v2043_v53 = vld [vmem:[%s3477_s7 + $0x18] sm:$0xff] }
 0x650   :  { %v1321_v57 = vpop.xlane.xlu0 %1320 }
 0x651   :  { %2826 = vrcp.f32 %v1321_v57  ;;  %v2042_v57 = vld [vmem:[%s3477_s7 + $0x10] sm:$0xff] }
 0x65e   :  { %v2827_v58 = vpop.eup %2826 }
 0x65f   :  { %1930 = vrot.lane.b32.xlu1 %v3212_v12, %s2872_s16  ;;  %v1349_v59 = vmul.f32 %v2827_v58, %v3266_v63  ;;  %s2879_s16 = smov 8   ;;  %v2040_v58 = vld [vmem:[%s3477_s7] sm:$0xff] }
 0x661   :  { %2701 = vmatmul.mubr.msk.f32.vlgmr.msra.gmra.mxu1 %vm1267_vm9, %v1349_v59  ;;  %v1363_v16 = vsel %vm1267_vm9, %v1349_v59, 0.0 }
 0x662   :  { %2711 = vmatpush3.msra.mxu1 %v1617_v13  ;;  %2714 = vmatprep.mubr.msk.f32.mxu1 %vm2876_vm8, %v2873_v29  ;;  %v2041_v13 = vld [vmem:[%s3477_s7 + $0x8] sm:$0xff] }
 0x663   :  { %2712 = vmatprep.subr.mxu1 %v2873_v29 }
 0x664   :  { %2713 = vmatpush3.msra.mxu1 %v1615_v60 }
 0x665   :  { %2724 = vmatprep.subr.mxu1 %v2873_v29 }
 0x67f   :  { %v1318_v8 = vpop.xlane.xlu1 %1317 }
 0x680   :  { %2828 = vrcp.f32 %v1318_v8 }
 0x68d   :  { %v2829_v12 = vpop.eup %2828 }
 0x68e   :  { %v3323_v9 = vmul.f32 %v2829_v12, %v3278_v11 }
 0x690   :  { %2694 = vmatmul.mubr.msk.f32.vlgmr.msra.gmra.mxu0 %vm1267_vm9, %v3323_v9 }
 0x691   :  { %2704 = vmatpush3.msra.mxu0 %v1538_v24  ;;  %2707 = vmatprep.mubr.msk.f32.mxu0 %vm2876_vm8, %v2873_v29 }
 0x692   :  { %2705 = vmatprep.subr.mxu0 %v2873_v29 }
 0x693   :  { %2706 = vmatpush3.msra.mxu0 %v1536_v44 }
 0x694   :  { %v1327_v37 = vpop.xlane.xlu0 %1326  ;;  %2717 = vmatprep.subr.mxu0 %v2873_v29 }
 0x695   :  { %2830 = vrcp.f32 %v1327_v37 }
 0x698   :  { %v1324_v38 = vpop.xlane.xlu1 %1323 }
 0x699   :  { %2832 = vrcp.f32 %v1324_v38 }
 0x69c   :  { %v1333_v5 = vpop.xlane.xlu0 %1332 }
 0x69d   :  { %2834 = vrcp.f32 %v1333_v5 }
 0x69e   :  { %v1330_v35 = vpop.xlane.xlu1 %1329 }
 0x69f   :  { %2836 = vrcp.f32 %v1330_v35 }
 0x6a2   :  { %v2831_v55 = vpop.eup %2830 }
 0x6a3   :  { %v1351_v63 = vmul.f32 %v2831_v55, %v3283_v27  ;;  %v1356_v27 = vsel %vm1267_vm9, %v3323_v9, 0.0 }
 0x6a4   :  { %v1339_v3 = vpop.xlane.xlu0 %1338 }
 0x6a5   :  { %2838 = vrcp.f32 %v1339_v3  ;;  %2715 = vmatmul.mubr.msk.f32.vlgmr.msra.gmra.mxu1 %vm1267_vm9, %v1351_v63  ;;  %v1364_v15 = vsel %vm1267_vm9, %v1351_v63, 0.0 }
 0x6a6   :  { %v2833_v6 = vpop.eup %2832  ;;  %2725 = vmatpush3.msra.mxu1 %v1775_v61  ;;  %2728 = vmatprep.mubr.msk.f32.mxu1 %vm2876_vm8, %v2873_v29  ;;  %v1365_v18 = vadd.f32 %v1364_v15, %v1363_v16 }
 0x6a7   :  { %2726 = vmatprep.subr.mxu1 %v2873_v29  ;;  %v1350_v56 = vmul.f32 %v2833_v6, %v3287_v32 }
 0x6a8   :  { %2727 = vmatpush3.msra.mxu1 %v1773_v62  ;;  %v1852_v4 = vpop.permute.xlu0 %1851 }
 0x6a9   :  { %2708 = vmatmul.mubr.msk.f32.vlgmr.msra.gmra.mxu0 %vm1267_vm9, %v1350_v56  ;;  %2738 = vmatprep.subr.mxu1 %v2873_v29 }
 0x6aa   :  { %v2835_v2 = vpop.eup %2834  ;;  %2718 = vmatpush3.msra.mxu0 %v1696_v48  ;;  %2721 = vmatprep.mubr.msk.f32.mxu0 %vm2876_vm8, %v2873_v29 }
 0x6ab   :  { %2719 = vmatprep.subr.mxu0 %v2873_v29  ;;  %v1353_v11 = vmul.f32 %v2835_v2, %v3293_v36 }
 0x6ac   :  { %v2837_v1 = vpop.eup %2836  ;;  %2720 = vmatpush3.msra.mxu0 %v1694_v49 }
 0x6ad   :  { %2729 = vmatmul.mubr.msk.f32.vlgmr.msra.gmra.mxu1 %vm1267_vm9, %v1353_v11  ;;  %2731 = vmatprep.subr.mxu0 %v2873_v29  ;;  %v1352_v14 = vmul.f32 %v2837_v1, %v3297_v40  ;;  %v1366_v17 = vsel %vm1267_vm9, %v1353_v11, 0.0 }
 0x6ae   :  { %2739 = vmatpush3.msra.mxu1 %v1933_v0  ;;  %2742 = vmatprep.mubr.msk.f32.mxu1 %vm2876_vm8, %v2873_v29  ;;  %v1367_v19 = vadd.f32 %v1366_v17, %v1365_v18 }
 0x6af   :  { %2722 = vmatmul.mubr.msk.f32.vlgmr.msra.gmra.mxu0 %vm1267_vm9, %v1352_v14  ;;  %2740 = vmatprep.subr.mxu1 %v2873_v29  ;;  %v1359_v28 = vsel %vm1267_vm9, %v1352_v14, 0.0 }
 0x6b0   :  { %2732 = vmatpush3.msra.mxu0 %v3310_v51  ;;  %2735 = vmatprep.mubr.msk.f32.mxu0 %vm2876_vm8, %v2873_v29 }
 0x6b1   :  { %2733 = vmatprep.subr.mxu0 %v2873_v29  ;;  %v1357_v29 = vsel %vm1267_vm9, %v1350_v56, 0.0  ;;  %v2477_v56 = vld [vmem:[%s3472_s2 + $0x6] ss:$0 sm:$0xff] }
 0x6b2   :  { %v2839_v7 = vpop.eup %2838  ;;  %2734 = vmatpush3.msra.mxu0 %v1852_v4  ;;  %v1358_v31 = vadd.f32 %v1357_v29, %v1356_v27  ;;  %v2173_v29 = vld [vmem:[%s3478_s8 + $0x8] sm:$0xff]  ;;  %v2172_v27 = vld [vmem:[%s3478_s8] sm:$0xff] }
 0x6b3   :  { %v1355_v10 = vmul.f32 %v2839_v7, %v3301_v42  ;;  %2745 = vmatprep.subr.mxu0 %v2043_v53 }
 0x6b4   :  { %v1360_v33 = vadd.f32 %v1359_v28, %v1358_v31  ;;  %v2271_v28 = vld [vmem:[%s3479_s9 + $0x38] sm:$0xff]  ;;  %v2269_v31 = vld [vmem:[%s3479_s9 + $0x28] sm:$0xff] }
 0x6b5   :  { %v1368_v20 = vsel %vm1267_vm9, %v1355_v10, 0.0 }
 0x6b6   :  { %v1369_v21 = vadd.f32 %v1368_v20, %v1367_v19 }
 0x6b8   :  { %v1372_v22 = vmul.f32 0.25, %v1369_v21 }
 0x6ba   :  { %v1374_v23 = vsel %vm1267_vm9, %v1372_v22, 0.0 }
 0x6bb   :  { %1376 = vst [vmem:[#allocation2 + $0x8] sm:$0xff] %v1374_v23 }
 0x6d7   :  { %v1336_v25 = vpop.xlane.xlu1 %1335 }
 0x6d8   :  { %2840 = vrcp.f32 %v1336_v25 }
 0x6db   :  { %v1931_v26 = vpop.permute.xlu1 %1930 }
 0x6dc   :  { %2741 = vmatpush3.msra.mxu1 %v1931_v26  ;;  %v2174_v26 = vld [vmem:[%s3478_s8 + $0x10] sm:$0xff] }
 0x6dd   :  { %2743 = vmatmul.mubr.msk.f32.vlgmr.msra.gmra.mxu1 %vm1267_vm9, %v1355_v10 }
 0x6e5   :  { %v2841_v30 = vpop.eup %2840 }
 0x6e6   :  { %v1354_v32 = vmul.f32 %v2841_v30, %v3308_v50  ;;  %v2270_v30 = vld [vmem:[%s3479_s9 + $0x30] sm:$0xff] }
 0x6e8   :  { %2736 = vmatmul.mubr.msk.f32.vlgmr.msra.gmra.mxu0 %vm1267_vm9, %v1354_v32  ;;  %v1361_v34 = vsel %vm1267_vm9, %v1354_v32, 0.0  ;;  %v2268_v32 = vld [vmem:[%s3479_s9 + $0x20] sm:$0xff] }
 0x6e9   :  { %v1362_v36 = vadd.f32 %v1361_v34, %v1360_v33  ;;  %2746 = vmatpush3.msra.mxu0 %v2043_v53  ;;  %v2266_v53 = vld [vmem:[%s3479_s9 + $0x10] sm:$0xff] }
 0x6ea   :  { %2747 = vmatprep.subr.mxu0 %v2042_v57 }
 0x6eb   :  { %v1371_v39 = vmul.f32 0.25, %v1362_v36  ;;  %2748 = vmatpush3.msra.mxu0 %v2042_v57  ;;  %v2265_v57 = vld [vmem:[%s3479_s9 + $0x8] sm:$0xff] }
 0x6ec   :  { %2749 = vmatprep.subr.mxu0 %v2041_v13 }
 0x6ed   :  { %v1373_v40 = vsel %vm1267_vm9, %v1371_v39, 0.0  ;;  %2750 = vmatpush3.msra.mxu0 %v2041_v13  ;;  %v2264_v13 = vld [vmem:[%s3479_s9] sm:$0xff] }
 0x6ee   :  { %1375 = vst [vmem:[#allocation2] sm:$0xff] %v1373_v40  ;;  %2751 = vmatprep.subr.mxu0 %v2040_v58 }
 0x6ef   :  { %2752 = vmatpush3.msra.mxu0 %v2040_v58  ;;  %v2482_v58 = vld [vmem:[%s3472_s2 + $0x9] ss:$0 sm:$0xff] }
 0x6f0   :  { %2767 = vmatprep.subr.mxu0 %v2271_v28 }
 0x721   :  { %v1531_v41 = vpop.f32.mrf.mxu1 }
 0x723   :  { %v2702_v42 = vpop.f32.mrf.mxu1 }
 0x750   :  { %v1452_v43 = vpop.f32.mrf.mxu0 }
 0x752   :  { %v2695_v24 = vpop.f32.mrf.mxu0 }
 0x765   :  { %v1689_v44 = vpop.f32.mrf.mxu1 }
 0x766   :  { %2013 = vrot.lane.b32.xlu1 %v1689_v44, %s2879_s16  ;;  %v2481_v44 = vld [vmem:[%s3472_s2 + $0x8] ss:$0 sm:$0xff] }
 0x767   :  { %v2716_v45 = vpop.f32.mrf.mxu1 }
 0x769   :  { %v1610_v46 = vpop.f32.mrf.mxu0 }
 0x76a   :  { %2011 = vrot.lane.b32.xlu0 %v1610_v46, %s2879_s16 }
 0x76b   :  { %v2709_v47 = vpop.f32.mrf.mxu0 }
 0x76d   :  { %v1847_v48 = vpop.f32.mrf.mxu1 }
 0x76e   :  { %2021 = vrot.lane.b32.xlu1 %v1847_v48, %s2880_s4 }
 0x76f   :  { %v1768_v49 = vpop.f32.mrf.mxu0  ;;  %v2730_v50 = vpop.f32.mrf.mxu1 }
 0x770   :  { %2019 = vrot.lane.b32.xlu0 %v1768_v49, %s2880_s4 }
 0x771   :  { %v2723_v51 = vpop.f32.mrf.mxu0 }
 0x772   :  { %v2267_v51 = vld [vmem:[%s3479_s9 + $0x18] sm:$0xff]  ;;  %s2882_s9 = smov [#allocation2]  }
 0x773   :  { %s2410_s3 = sshll.u32 %s2882_s9, 4  ;;  %s2411_s3 = int_to_ptr.vmem [resolvable:$true] %s2410_s3 }
 0x774   :  { %s2850_s12 = scalar_lea.vmem %s2411_s3, 256  ;;  %p2855_p1 = scmp.lt.s32.totalorder %s2411_s3, %s2411_s3 }
 0x775   :  { %p2851_p0 = scmp.ne.s32.totalorder %s2411_s3, %s2850_s12  ;;  %p2856_p2 = scmp.lt.s32.totalorder %s2850_s12, %s2850_s12 }
 0x777   :  { %p2857_p3 = por %p2856_p2, %p2855_p1 }
 0x779   :  { %p2858_p4 = pnand %p2857_p3, %p2851_p0 }
 0x79d   :  { %v2005_v59 = vpop.f32.mrf.mxu1 }
 0x79e   :  { %2029 = vrot.lane.b32.xlu1 %v2005_v59, %s2881_s25 }
 0x79f   :  { %v2744_v60 = vpop.f32.mrf.mxu1 }
 0x7a8   :  { %v1926_v61 = vpop.f32.mrf.mxu0 }
 0x7a9   :  { %2027 = vrot.lane.b32.xlu0 %v1926_v61, %s2881_s25 }
 0x7aa   :  { %v2737_v62 = vpop.f32.mrf.mxu0 }
 0x7d8   :  { %v2014_v0 = vpop.permute.xlu1 %2013 }
 0x7d9   :  { %v2034_v5 = vsel %vm616_vm7, %v1531_v41, %v2014_v0 }
 0x7dc   :  { %v2012_v8 = vpop.permute.xlu0 %2011 }
 0x7dd   :  { %v2033_v37 = vsel %vm616_vm7, %v1452_v43, %v2012_v8  ;;  %v2480_v43 = vld [vmem:[%s3472_s2 + $0x7] ss:$0 sm:$0xff] }
 0x7e0   :  { %v2022_v12 = vpop.permute.xlu1 %2021 }
 0x7e1   :  { %v2036_v63 = vsel %vm1267_vm9, %v2034_v5, %v2022_v12  ;;  %v2485_v12 = vld [vmem:[%s3472_s2 + $0xa] ss:$0 sm:$0xff] }
 0x7e2   :  { %v2020_v9 = vpop.permute.xlu0 %2019 }
 0x7e3   :  { %v2035_v35 = vsel %vm1267_vm9, %v2033_v37, %v2020_v9 }
 0x810   :  { %v2030_v38 = vpop.permute.xlu1 %2029 }
 0x811   :  { %v2039_v6 = vsel %vm2037_vm10, %v2036_v63, %v2030_v38 }
 0x81b   :  { %v2028_v55 = vpop.permute.xlu0 %2027 }
 0x81c   :  { %v2038_v3 = vsel %vm2037_vm10, %v2035_v35, %v2028_v55 }
 0x81d   :  { %2753 = vmatprep.mubr.msk.f32.mxu0 %vm76_vm0, %v2038_v3 }
 0x81e   :  { %2754 = vmatmul.mubr.msk.f32.vlgmr.msra.gmra.mxu0 %vm76_vm0, %v2039_v6 }
 0x81f   :  { %2768 = vmatpush3.msra.mxu0 %v2271_v28 }
 0x820   :  { %2769 = vmatprep.subr.mxu0 %v2270_v30 }
 0x821   :  { %2770 = vmatpush3.msra.mxu0 %v2270_v30 }
 0x822   :  { %2771 = vmatprep.subr.mxu0 %v2269_v31 }
 0x823   :  { %2772 = vmatpush3.msra.mxu0 %v2269_v31 }
 0x824   :  { %2773 = vmatprep.subr.mxu0 %v2268_v32 }
 0x825   :  { %2774 = vmatpush3.msra.mxu0 %v2268_v32 }
 0x826   :  { %2775 = vmatprep.subr.mxu0 %v2267_v51 }
 0x827   :  { %2776 = vmatpush3.msra.mxu0 %v2267_v51 }
 0x828   :  { %2777 = vmatprep.subr.mxu0 %v2266_v53 }
 0x829   :  { %2778 = vmatpush3.msra.mxu0 %v2266_v53 }
 0x82a   :  { %2779 = vmatprep.subr.mxu0 %v2265_v57 }
 0x82b   :  { %2780 = vmatpush3.msra.mxu0 %v2265_v57 }
 0x82c   :  { %2781 = vmatprep.subr.mxu0 %v2264_v13 }
 0x82d   :  { %2782 = vmatpush3.msra.mxu0 %v2264_v13 }
 0x8de   :  { %v2755_v2 = vpop.f32.mrf.mxu0 }
 0x8df   :  { %v2127_v11 = vadd.f32 %v2755_v2, %v2477_v56 }
 0x8e0   :  { %v2121_v1 = vpop.f32.mrf.mxu0 }
 0x8e1   :  { %v2122_v14 = vadd.f32 %v2477_v56, %v2121_v1  ;;  %v2131_v15 = vadd.f32 %v2127_v11, %v3120_v54 }
 0x8e3   :  { %v2137_v16 = vsel %vm76_vm0, %v2131_v15, 0.0  ;;  %v2130_v4 = vadd.f32 %v2122_v14, %v3116_v52  ;;  %v2175_v52 = vld [vmem:[%s3478_s8 + $0x18] sm:$0xff] }
 0x8e4   :  { %2138 = vadd.xlane.f32.xlu1 %v2137_v16  ;;  %2756 = vmatprep.subr.mxu1 %v2175_v52 }
 0x8e5   :  { %v2134_v17 = vsel %vm76_vm0, %v2130_v4, 0.0  ;;  %2757 = vmatpush3.msra.mxu1 %v2175_v52 }
 0x8e6   :  { %2135 = vadd.xlane.f32.xlu0 %v2134_v17  ;;  %2758 = vmatprep.subr.mxu1 %v2174_v26 }
 0x8e7   :  { %2759 = vmatpush3.msra.mxu1 %v2174_v26 }
 0x8e8   :  { %2760 = vmatprep.subr.mxu1 %v2173_v29 }
 0x8e9   :  { %2761 = vmatpush3.msra.mxu1 %v2173_v29 }
 0x8ea   :  { %2762 = vmatprep.subr.mxu1 %v2172_v27 }
 0x8eb   :  { %2763 = vmatpush3.msra.mxu1 %v2172_v27 }
 0x96d   :  { %v2139_v7 = vpop.xlane.xlu1 %2138 }
 0x96e   :  { %v2141_v18 = vmul.f32 0.03125, %v2139_v7 }
 0x96f   :  { %v2136_v10 = vpop.xlane.xlu0 %2135 }
 0x970   :  { %v2140_v19 = vmul.f32 0.03125, %v2136_v10  ;;  %v2143_v20 = vsub.f32 %v2131_v15, %v2141_v18 }
 0x972   :  { %v2142_v21 = vsub.f32 %v2130_v4, %v2140_v19  ;;  %v2145_v25 = vmul.f32 %v2143_v20, %v2143_v20 }
 0x974   :  { %v2144_v22 = vmul.f32 %v2142_v21, %v2142_v21  ;;  %v2149_v54 = vsel %vm76_vm0, %v2145_v25, 0.0 }
 0x976   :  { %v2146_v23 = vsel %vm76_vm0, %v2144_v22, 0.0 }
 0x977   :  { %2147 = vadd.xlane.f32.xlu0 %v2146_v23 }
 0x97b   :  { %2150 = vadd.xlane.f32.xlu0 %v2149_v54 }
 0xa00   :  { %v2148_v33 = vpop.xlane.xlu0 %2147 }
 0xa01   :  { %v2152_v34 = vmul.f32 0.03125, %v2148_v33 }
 0xa03   :  { %v2154_v36 = vadd.f32 1e-05, %v2152_v34 }
 0xa04   :  { %v2151_v39 = vpop.xlane.xlu0 %2150 }
 0xa05   :  { %2842 = vrsqrt.f32 %v2154_v36  ;;  %v2153_v40 = vmul.f32 0.03125, %v2151_v39 }
 0xa07   :  { %v2155_v41 = vadd.f32 1e-05, %v2153_v40 }
 0xa09   :  { %2844 = vrsqrt.f32 %v2155_v41 }
 0xa12   :  { %v2843_v42 = vpop.eup %2842 }
 0xa13   :  { %v2158_v24 = vmul.f32 %v2843_v42, %v2142_v21 }
 0xa15   :  { %v2164_v45 = vmul.f32 %v2480_v43, %v2158_v24 }
 0xa16   :  { %v2845_v46 = vpop.eup %2844 }
 0xa17   :  { %v2159_v47 = vmul.f32 %v2845_v46, %v2143_v20  ;;  %v2170_v48 = vadd.f32 %v2481_v44, %v2164_v45 }
 0xa19   :  { %v2165_v49 = vmul.f32 %v2480_v43, %v2159_v47  ;;  %2764 = vmatprep.mubr.msk.f32.mxu1 %vm76_vm0, %v2170_v48 }
 0xa1b   :  { %v2171_v50 = vadd.f32 %v2481_v44, %v2165_v49 }
 0xa1d   :  { %2765 = vmatmul.mubr.msk.f32.vlgmr.msra.gmra.mxu1 %vm76_vm0, %v2171_v50 }
 0xadd   :  { %v2766_v59 = vpop.f32.mrf.mxu1 }
 0xade   :  { %v2259_v60 = vadd.f32 %v2766_v59, %v2482_v58 }
 0xadf   :  { %v2253_v61 = vpop.f32.mrf.mxu1 }
 0xae0   :  { %v2254_v62 = vadd.f32 %v2482_v58, %v2253_v61  ;;  %v2263_v8 = vmax.f32 %v2259_v60, 0.0 }
 0xae2   :  { %v2262_v0 = vmax.f32 %v2254_v62, 0.0 }
 0xae4   :  { %2783 = vmatprep.mubr.msk.f32.mxu0 %vm2277_vm11, %v2262_v0 }
 0xae5   :  { %2784 = vmatmul.mubr.msk.f32.vlgmr.msra.gmra.mxu0 %vm2277_vm11, %v2263_v8 }
 0xba5   :  { %v2785_v9 = vpop.f32.mrf.mxu0 }
 0xba6   :  { %v2356_v37 = vadd.f32 %v2785_v9, %v2485_v12 }
 0xba7   :  { %v2350_v38 = vpop.f32.mrf.mxu0 }
 0xba8   :  { %v2351_v5 = vadd.f32 %v2485_v12, %v2350_v38  ;;  %v2360_v35 = vadd.f32 %v2356_v37, %v2171_v50 }
 0xbaa   :  { %v2366_v55 = vsel %vm76_vm0, %v2360_v35, 0.0  ;;  %v2359_v63 = vadd.f32 %v2351_v5, %v2170_v48 }
 0xbab   :  { %2367 = vadd.xlane.f32.xlu0 %v2366_v55 }
 0xbac   :  { %v2363_v3 = vsel %vm76_vm0, %v2359_v63, 0.0 }
 0xbad   :  { %2364 = vadd.xlane.f32.xlu1 %v2363_v3 }
 0xc34   :  { %v2368_v6 = vpop.xlane.xlu0 %2367 }
 0xc35   :  { %v2370_v56 = vmul.f32 0.03125, %v2368_v6 }
 0xc36   :  { %v2365_v2 = vpop.xlane.xlu1 %2364 }
 0xc37   :  { %v2372_v11 = vsub.f32 %v2360_v35, %v2370_v56  ;;  %v2369_v1 = vmul.f32 0.03125, %v2365_v2 }
 0xc39   :  { %v2371_v14 = vsub.f32 %v2359_v63, %v2369_v1  ;;  %v2374_v15 = vmul.f32 %v2372_v11, %v2372_v11 }
 0xc3b   :  { %v2378_v16 = vsel %vm76_vm0, %v2374_v15, 0.0  ;;  %v2373_v4 = vmul.f32 %v2371_v14, %v2371_v14 }
 0xc3c   :  { %2379 = vadd.xlane.f32.xlu0 %v2378_v16 }
 0xc3d   :  { %v2375_v17 = vsel %vm76_vm0, %v2373_v4, 0.0 }
 0xc3e   :  { %2376 = vadd.xlane.f32.xlu1 %v2375_v17 }
 0xc3f   :  { %2861 = shalt.err (!%p2858_p4)
}
 0xc40   :  { %s2883_s13 = smov 128   ;;  %v2488_v23 = vld [vmem:[%s3472_s2 + $0xb] ss:$0 sm:$0xff]  ;;  %v2489_v52 = vld [vmem:[%s3472_s2 + $0xc] ss:$0 sm:$0xff] }
 0xc41   :  { %2416 = dma.vmem_to_hbm [thread:$0]  %s2411_s3, 256, %s3481_s11, [#allocation3], %s2883_s13, %s2883_s13, %s2879_s16  }
 0xcc5   :  { %v2380_v7 = vpop.xlane.xlu0 %2379 }
 0xcc6   :  { %v2382_v18 = vmul.f32 0.03125, %v2380_v7 }
 0xcc7   :  { %v2377_v10 = vpop.xlane.xlu1 %2376 }
 0xcc8   :  { %v2384_v19 = vadd.f32 1e-05, %v2382_v18  ;;  %v2381_v20 = vmul.f32 0.03125, %v2377_v10 }
 0xcca   :  { %2846 = vrsqrt.f32 %v2384_v19  ;;  %v2383_v21 = vadd.f32 1e-05, %v2381_v20 }
 0xccc   :  { %2848 = vrsqrt.f32 %v2383_v21 }
 0xcd7   :  { %v2847_v22 = vpop.eup %2846 }
 0xcd8   :  { %v2388_v25 = vmul.f32 %v2847_v22, %v2372_v11 }
 0xcd9   :  { %v2849_v54 = vpop.eup %2848 }
 0xcda   :  { %v2394_v26 = vmul.f32 %v2488_v23, %v2388_v25  ;;  %v2387_v29 = vmul.f32 %v2849_v54, %v2371_v14 }
 0xcdc   :  { %v2400_v27 = vadd.f32 %v2489_v52, %v2394_v26  ;;  %v2393_v28 = vmul.f32 %v2488_v23, %v2387_v29 }
 0xcde   :  { %2402 = vst.msk [vmem:[%s3480_s10 + $0x8] sm:$0xff] %vm76_vm0, %v2400_v27  ;;  %v2399_v30 = vadd.f32 %v2489_v52, %v2393_v28 }
 0xce0   :  { %2401 = vst.msk [vmem:[%s3480_s10] sm:$0xff] %vm76_vm0, %v2399_v30 }
 0xce1   :  { %2870 = dma.done.wait [#allocation3], 256  }
 0xce2   :  { %2871 = vsyncadd [#allocation3], 4294967040 }
 0xce3   :  { %2422 = vsyncpa [#allocation3], 1 }

</bundles_post_ra>
